<compile_context>
chip_gen: v7x
topology: tpu7x:2x2x1
jax: 0.10.0
libtpu: 0.0.40
codegen_flags: <defaults>
</compile_context>

<pallas_src>
import functools

import jax
import jax.numpy as jnp
from jax.experimental import pallas as pl
from jax.experimental.pallas import tpu as pltpu


def _bmed_lstm_kernel(dt, num_steps, hidden_size,
                      # inputs
                      x_ref, s0_ref,
                      w_ih0x_ref, w_rec0_ref, b0_ref,
                      w_ih1_ref, w_hh1_ref, b1_ref,
                      fc_w_ref, fc_b_ref,
                      # output: (B, 2*T*s_size)  [outputs | res], time-major lanes
                      out_ref):
    H = hidden_size
    B = x_ref.shape[0]
    f32 = jnp.float32
    bf16 = jnp.bfloat16

    # ---- hoisted, time-invariant quantities -------------------------------
    # x is constant across steps -> its gate contribution (plus fused bias b0)
    # is computed exactly once.
    x_part = (jnp.dot(x_ref[...].astype(bf16), w_ih0x_ref[...],
                      preferred_element_type=f32)
              + b0_ref[...])                                   # (B, 4H) f32

    w_rec0 = w_rec0_ref[...]        # (H + s_size, 4H) bf16  (fused [h0 | s] weight)
    w_ih1 = w_ih1_ref[...]          # (H, 4H) bf16
    w_hh1 = w_hh1_ref[...]          # (H, 4H) bf16
    fc_w = fc_w_ref[...]            # (H, s_size) bf16
    # Hoist bias broadcasts out of the loop (JAX does not CSE broadcast_in_dim).
    b1 = jnp.broadcast_to(b1_ref[...], (B, 4 * H))             # f32
    fc_b = jnp.broadcast_to(fc_b_ref[...], (B, fc_w.shape[1]))  # f32

    # ---- recurrent state lives in vregs (no scratch round-trips) ----------
    h0 = jnp.zeros((B, H), f32)
    c0 = jnp.zeros((B, H), f32)
    h1 = jnp.zeros((B, H), f32)
    c1 = jnp.zeros((B, H), f32)
    s = s0_ref[...]                                            # (B, s_size) f32

    def lstm_cell(gates, c_prev):
        # PyTorch gate order: i, f, g, o — all elementwise math in f32.
        i = jax.nn.sigmoid(gates[:, 0 * H:1 * H])
        f = jax.nn.sigmoid(gates[:, 1 * H:2 * H])
        g = jnp.tanh(gates[:, 2 * H:3 * H])
        o = jax.nn.sigmoid(gates[:, 3 * H:4 * H])
        c_new = f * c_prev + i * g
        h_new = o * jnp.tanh(c_new)
        return h_new, c_new

    outs = []
    res = []
    # Fully unrolled: num_steps is a static Python int (small for this model).
    for _ in range(num_steps):
        # layer 0: fused recurrent matmul over [h0 | current_s]
        hs0 = jnp.concatenate([h0, s], axis=-1).astype(bf16)   # (B, H+s_size)
        gates0 = x_part + jnp.dot(hs0, w_rec0, preferred_element_type=f32)
        h0, c0 = lstm_cell(gates0, c0)

        # layer 1 (nn.LSTM inter-layer dropout is identity in eval mode);
        # the h1 @ w_hh1 dot only depends on previous-step state, so keep it
        # separate from the h0_new dot (off the within-step critical path).
        gates1 = (jnp.dot(h0.astype(bf16), w_ih1, preferred_element_type=f32)
                  + jnp.dot(h1.astype(bf16), w_hh1, preferred_element_type=f32)
                  + b1)
        h1, c1 = lstm_cell(gates1, c1)

        # fc head; nn.Dropout on lstm_out is identity in eval mode
        step_out = jnp.dot(h1.astype(bf16), fc_w,
                           preferred_element_type=f32) + fc_b
        s = s + step_out * dt

        outs.append(s)          # outputs[:, t, :]
        res.append(step_out)    # res_step[t]

    # One lane-dense store: [outputs(t=0..T-1) | res(t=0..T-1)] along lanes.
    out_ref[...] = jnp.concatenate(outs + res, axis=-1)


def bmed_lstm_forward(params, x, s0, dt, max_time):
    """Replicates BMEDLSTM.forward(x, s0, dt, max_time) in eval mode."""
    # Replicate the Python `while cal_t <= max_time` float loop to get the
    # (static) number of steps and the cal_times values.
    cal_times = []
    cal_t = 0.0
    while cal_t <= max_time:
        cal_times.append(cal_t)
        cal_t += dt
    T = len(cal_times)

    B = x.shape[0]
    H = params["hidden_size"]
    s_size = s0.shape[1]

    # Pad batch to a multiple of 8 (f32 sublane count) so vregs are full;
    # padded rows are zeros and sliced away below.
    B_pad = max(8, ((B + 7) // 8) * 8)
    if B_pad != B:
        x_p = jnp.zeros((B_pad, x.shape[1]), x.dtype).at[:B].set(x)
        s0_p = jnp.zeros((B_pad, s_size), s0.dtype).at[:B].set(s0)
    else:
        x_p, s0_p = x, s0

    kernel = functools.partial(_bmed_lstm_kernel, float(dt), T, H)
    vmem = pl.BlockSpec(memory_space=pltpu.MemorySpace.VMEM)

    combined = pl.pallas_call(
        kernel,
        out_shape=jax.ShapeDtypeStruct((B_pad, 2 * T * s_size), jnp.float32),
        in_specs=[vmem] * 10,
        out_specs=vmem,
    )(x_p, s0_p,
      params["w_ih0x"], params["w_rec0"], params["b0"],
      params["w_ih1"], params["w_hh1"], params["b1"],
      params["fc_w"], params["fc_b"])

    outputs = combined[:B, :T * s_size].reshape(B, T, s_size)
    res = combined[:B, T * s_size:].reshape(B, T, s_size)
    cal_times_arr = jnp.asarray(cal_times, dtype=jnp.float32)
    # PyTorch API returns a list of (B, 1, s_size) tensors; build it from the
    # single result array outside the kernel (cheap views, no extra transpose).
    res_step = [res[:, t:t + 1, :] for t in range(T)]
    return outputs, cal_times_arr, res_step


def init_params(key, x_size, s_size, hidden_size):
    """Deterministic init mirroring nn.LSTM / nn.Linear shapes (uniform(-k, k))."""
    H = hidden_size
    in0 = x_size + s_size
    k_lstm = 1.0 / jnp.sqrt(jnp.float32(H))
    k_fc = 1.0 / jnp.sqrt(jnp.float32(H))
    keys = jax.random.split(key, 10)

    def u(k, shape, scale):
        return jax.random.uniform(k, shape, jnp.float32, -scale, scale)

    # layer 0 (input size = x_size + s_size), PyTorch layout (4H, in)
    w_ih0 = u(keys[0], (4 * H, in0), k_lstm)
    w_hh0 = u(keys[1], (4 * H, H), k_lstm)
    b_ih0 = u(keys[2], (4 * H,), k_lstm)
    b_hh0 = u(keys[3], (4 * H,), k_lstm)
    # layer 1 (input size = H)
    w_ih1 = u(keys[4], (4 * H, H), k_lstm)
    w_hh1 = u(keys[5], (4 * H, H), k_lstm)
    b_ih1 = u(keys[6], (4 * H,), k_lstm)
    b_hh1 = u(keys[7], (4 * H,), k_lstm)
    # fc: Linear(H, s_size)
    fc_w = u(keys[8], (s_size, H), k_fc)
    fc_b = u(keys[9], (s_size,), k_fc)

    bf16 = jnp.bfloat16
    w_ih0x = jnp.transpose(w_ih0[:, :x_size])                  # (x_size, 4H)
    w_ih0s = jnp.transpose(w_ih0[:, x_size:])                  # (s_size, 4H)
    w_hh0_t = jnp.transpose(w_hh0)                             # (H, 4H)
    # Fused layer-0 recurrent weight for the [h0 | s] operand.
    w_rec0 = jnp.concatenate([w_hh0_t, w_ih0s], axis=0)        # (H+s_size, 4H)

    return {
        "hidden_size": H,
        # Matmul operands in bf16 (f32 MXU accumulation inside the kernel);
        # biases / elementwise state stay f32.
        "w_ih0x": w_ih0x.astype(bf16),                         # (x_size, 4H)
        "w_rec0": w_rec0.astype(bf16),                         # (H+s_size, 4H)
        "b0": (b_ih0 + b_hh0)[None, :],                        # (1, 4H) f32
        "w_ih1": jnp.transpose(w_ih1).astype(bf16),            # (H, 4H)
        "w_hh1": jnp.transpose(w_hh1).astype(bf16),            # (H, 4H)
        "b1": (b_ih1 + b_hh1)[None, :],                        # (1, 4H) f32
        "fc_w": jnp.transpose(fc_w).astype(bf16),              # (H, s_size)
        "fc_b": fc_b[None, :],                                 # (1, s_size) f32
    }


if __name__ == "__main__":
    key = jax.random.PRNGKey(0)
    B, x_size, s_size, hidden_size = 2, 6, 4, 32
    dt = 0.1
    max_time = 0.75  # -> 8 integration steps (t = 0.0 .. 0.7)

    kp, kx, ks = jax.random.split(key, 3)
    params = init_params(kp, x_size, s_size, hidden_size)
    x = jax.random.normal(kx, (B, x_size), jnp.float32)
    s0 = jax.random.normal(ks, (B, s_size), jnp.float32)

    outputs, cal_times, res_step = bmed_lstm_forward(params, x, s0, dt, max_time)
    jax.block_until_ready(outputs)
    jax.block_until_ready(cal_times)
    jax.block_until_ready(res_step[-1])

    T = cal_times.shape[0]
    assert outputs.shape == (B, T, s_size)
    assert len(res_step) == T
    assert all(r.shape == (B, 1, s_size) for r in res_step)
    assert bool(jnp.all(jnp.isfinite(outputs)))
    print("KERNEL_OK")
</pallas_src>

<mosaic_0001>
module attributes {stable_mosaic.version = 11 : i64} {
  func.func @_bmed_lstm_kernel(%arg0: memref<8x6xf32, #tpu.memory_space<vmem>>, %arg1: memref<8x4xf32, #tpu.memory_space<vmem>>, %arg2: memref<6x128xbf16, #tpu.memory_space<vmem>>, %arg3: memref<36x128xbf16, #tpu.memory_space<vmem>>, %arg4: memref<1x128xf32, #tpu.memory_space<vmem>>, %arg5: memref<32x128xbf16, #tpu.memory_space<vmem>>, %arg6: memref<32x128xbf16, #tpu.memory_space<vmem>>, %arg7: memref<1x128xf32, #tpu.memory_space<vmem>>, %arg8: memref<32x4xbf16, #tpu.memory_space<vmem>>, %arg9: memref<1x4xf32, #tpu.memory_space<vmem>>, %arg10: memref<8x64xf32, #tpu.memory_space<vmem>>) attributes {dimension_semantics = [], scalar_prefetch = 0 : i64, scratch_operands = 0 : i64, tpu.core_type = #tpu.core_type<tc>} {
    %c0 = arith.constant 0 : index
    %c0_0 = arith.constant 0 : index
    %0 = vector.load %arg0[%c0, %c0_0] : memref<8x6xf32, #tpu.memory_space<vmem>>, vector<8x6xf32>
    %1 = arith.truncf %0 : vector<8x6xf32> to vector<8x6xbf16>
    %c0_1 = arith.constant 0 : index
    %c0_2 = arith.constant 0 : index
    %2 = vector.load %arg2[%c0_1, %c0_2] : memref<6x128xbf16, #tpu.memory_space<vmem>>, vector<6x128xbf16>
    %cst = arith.constant dense<0.000000e+00> : vector<8x128xf32>
    %3 = tpu.matmul %1, %2, %cst {dimension_numbers = #tpu.dot_dimension_numbers<[1], [0], [0], [1], [0, 0, 1, 1], [], []>} : vector<8x6xbf16>, vector<6x128xbf16>, vector<8x128xf32> -> vector<8x128xf32>
    %c0_3 = arith.constant 0 : index
    %c0_4 = arith.constant 0 : index
    %4 = vector.load %arg4[%c0_3, %c0_4] : memref<1x128xf32, #tpu.memory_space<vmem>>, vector<1x128xf32>
    %5 = vector.broadcast %4 : vector<1x128xf32> to vector<8x128xf32>
    %6 = arith.addf %3, %5 : vector<8x128xf32>
    %c0_5 = arith.constant 0 : index
    %c0_6 = arith.constant 0 : index
    %7 = vector.load %arg3[%c0_5, %c0_6] : memref<36x128xbf16, #tpu.memory_space<vmem>>, vector<36x128xbf16>
    %c0_7 = arith.constant 0 : index
    %c0_8 = arith.constant 0 : index
    %8 = vector.load %arg5[%c0_7, %c0_8] : memref<32x128xbf16, #tpu.memory_space<vmem>>, vector<32x128xbf16>
    %c0_9 = arith.constant 0 : index
    %c0_10 = arith.constant 0 : index
    %9 = vector.load %arg6[%c0_9, %c0_10] : memref<32x128xbf16, #tpu.memory_space<vmem>>, vector<32x128xbf16>
    %c0_11 = arith.constant 0 : index
    %c0_12 = arith.constant 0 : index
    %10 = vector.load %arg8[%c0_11, %c0_12] : memref<32x4xbf16, #tpu.memory_space<vmem>>, vector<32x4xbf16>
    %c0_13 = arith.constant 0 : index
    %c0_14 = arith.constant 0 : index
    %11 = vector.load %arg7[%c0_13, %c0_14] : memref<1x128xf32, #tpu.memory_space<vmem>>, vector<1x128xf32>
    %12 = vector.shape_cast %11 : vector<1x128xf32> to vector<1x128xf32>
    %13 = vector.broadcast %12 : vector<1x128xf32> to vector<8x128xf32>
    %c0_15 = arith.constant 0 : index
    %c0_16 = arith.constant 0 : index
    %14 = vector.load %arg9[%c0_15, %c0_16] : memref<1x4xf32, #tpu.memory_space<vmem>>, vector<1x4xf32>
    %15 = vector.shape_cast %14 : vector<1x4xf32> to vector<1x4xf32>
    %16 = vector.broadcast %15 : vector<1x4xf32> to vector<8x4xf32>
    %cst_17 = arith.constant 0.000000e+00 : f32
    %17 = vector.broadcast %cst_17 : f32 to vector<8x32xf32>
    %cst_18 = arith.constant 0.000000e+00 : f32
    %18 = vector.broadcast %cst_18 : f32 to vector<8x32xf32>
    %cst_19 = arith.constant 0.000000e+00 : f32
    %19 = vector.broadcast %cst_19 : f32 to vector<8x32xf32>
    %cst_20 = arith.constant 0.000000e+00 : f32
    %20 = vector.broadcast %cst_20 : f32 to vector<8x32xf32>
    %c0_21 = arith.constant 0 : index
    %c0_22 = arith.constant 0 : index
    %21 = vector.load %arg1[%c0_21, %c0_22] : memref<8x4xf32, #tpu.memory_space<vmem>>, vector<8x4xf32>
    %22 = tpu.concatenate %17, %21 in 1 : vector<8x32xf32>, vector<8x4xf32> -> vector<8x36xf32>
    %23 = arith.truncf %22 : vector<8x36xf32> to vector<8x36xbf16>
    %cst_23 = arith.constant dense<0.000000e+00> : vector<8x128xf32>
    %24 = tpu.matmul %23, %7, %cst_23 {dimension_numbers = #tpu.dot_dimension_numbers<[1], [0], [0], [1], [0, 0, 1, 1], [], []>} : vector<8x36xbf16>, vector<36x128xbf16>, vector<8x128xf32> -> vector<8x128xf32>
    %25 = arith.addf %6, %24 : vector<8x128xf32>
    %26 = vector.extract_strided_slice %25 {offsets = [0, 0], sizes = [8, 32], strides = [1, 1]} : vector<8x128xf32> to vector<8x32xf32>
    %27 = arith.negf %26 : vector<8x32xf32>
    %28 = math.exp %27 : vector<8x32xf32>
    %cst_24 = arith.constant 1.000000e+00 : f32
    %29 = vector.broadcast %cst_24 : f32 to vector<8x32xf32>
    %30 = arith.addf %29, %28 : vector<8x32xf32>
    %31 = arith.divf %29, %30 : vector<8x32xf32>
    %32 = vector.extract_strided_slice %25 {offsets = [0, 32], sizes = [8, 32], strides = [1, 1]} : vector<8x128xf32> to vector<8x32xf32>
    %33 = arith.negf %32 : vector<8x32xf32>
    %34 = math.exp %33 : vector<8x32xf32>
    %cst_25 = arith.constant 1.000000e+00 : f32
    %35 = vector.broadcast %cst_25 : f32 to vector<8x32xf32>
    %36 = arith.addf %35, %34 : vector<8x32xf32>
    %37 = arith.divf %35, %36 : vector<8x32xf32>
    %38 = vector.extract_strided_slice %25 {offsets = [0, 64], sizes = [8, 32], strides = [1, 1]} : vector<8x128xf32> to vector<8x32xf32>
    %39 = math.tanh %38 : vector<8x32xf32>
    %40 = vector.extract_strided_slice %25 {offsets = [0, 96], sizes = [8, 32], strides = [1, 1]} : vector<8x128xf32> to vector<8x32xf32>
    %41 = arith.negf %40 : vector<8x32xf32>
    %42 = math.exp %41 : vector<8x32xf32>
    %cst_26 = arith.constant 1.000000e+00 : f32
    %43 = vector.broadcast %cst_26 : f32 to vector<8x32xf32>
    %44 = arith.addf %43, %42 : vector<8x32xf32>
    %45 = arith.divf %43, %44 : vector<8x32xf32>
    %46 = arith.mulf %37, %18 : vector<8x32xf32>
    %47 = arith.mulf %31, %39 : vector<8x32xf32>
    %48 = arith.addf %46, %47 : vector<8x32xf32>
    %49 = math.tanh %48 : vector<8x32xf32>
    %50 = arith.mulf %45, %49 : vector<8x32xf32>
    %51 = arith.truncf %50 : vector<8x32xf32> to vector<8x32xbf16>
    %cst_27 = arith.constant dense<0.000000e+00> : vector<8x128xf32>
    %52 = tpu.matmul %51, %8, %cst_27 {dimension_numbers = #tpu.dot_dimension_numbers<[1], [0], [0], [1], [0, 0, 1, 1], [], []>} : vector<8x32xbf16>, vector<32x128xbf16>, vector<8x128xf32> -> vector<8x128xf32>
    %53 = arith.truncf %19 : vector<8x32xf32> to vector<8x32xbf16>
    %cst_28 = arith.constant dense<0.000000e+00> : vector<8x128xf32>
    %54 = tpu.matmul %53, %9, %cst_28 {dimension_numbers = #tpu.dot_dimension_numbers<[1], [0], [0], [1], [0, 0, 1, 1], [], []>} : vector<8x32xbf16>, vector<32x128xbf16>, vector<8x128xf32> -> vector<8x128xf32>
    %55 = arith.addf %52, %54 : vector<8x128xf32>
    %56 = arith.addf %55, %13 : vector<8x128xf32>
    %57 = vector.extract_strided_slice %56 {offsets = [0, 0], sizes = [8, 32], strides = [1, 1]} : vector<8x128xf32> to vector<8x32xf32>
    %58 = arith.negf %57 : vector<8x32xf32>
    %59 = math.exp %58 : vector<8x32xf32>
    %cst_29 = arith.constant 1.000000e+00 : f32
    %60 = vector.broadcast %cst_29 : f32 to vector<8x32xf32>
    %61 = arith.addf %60, %59 : vector<8x32xf32>
    %62 = arith.divf %60, %61 : vector<8x32xf32>
    %63 = vector.extract_strided_slice %56 {offsets = [0, 32], sizes = [8, 32], strides = [1, 1]} : vector<8x128xf32> to vector<8x32xf32>
    %64 = arith.negf %63 : vector<8x32xf32>
    %65 = math.exp %64 : vector<8x32xf32>
    %cst_30 = arith.constant 1.000000e+00 : f32
    %66 = vector.broadcast %cst_30 : f32 to vector<8x32xf32>
    %67 = arith.addf %66, %65 : vector<8x32xf32>
    %68 = arith.divf %66, %67 : vector<8x32xf32>
    %69 = vector.extract_strided_slice %56 {offsets = [0, 64], sizes = [8, 32], strides = [1, 1]} : vector<8x128xf32> to vector<8x32xf32>
    %70 = math.tanh %69 : vector<8x32xf32>
    %71 = vector.extract_strided_slice %56 {offsets = [0, 96], sizes = [8, 32], strides = [1, 1]} : vector<8x128xf32> to vector<8x32xf32>
    %72 = arith.negf %71 : vector<8x32xf32>
    %73 = math.exp %72 : vector<8x32xf32>
    %cst_31 = arith.constant 1.000000e+00 : f32
    %74 = vector.broadcast %cst_31 : f32 to vector<8x32xf32>
    %75 = arith.addf %74, %73 : vector<8x32xf32>
    %76 = arith.divf %74, %75 : vector<8x32xf32>
    %77 = arith.mulf %68, %20 : vector<8x32xf32>
    %78 = arith.mulf %62, %70 : vector<8x32xf32>
    %79 = arith.addf %77, %78 : vector<8x32xf32>
    %80 = math.tanh %79 : vector<8x32xf32>
    %81 = arith.mulf %76, %80 : vector<8x32xf32>
    %82 = arith.truncf %81 : vector<8x32xf32> to vector<8x32xbf16>
    %cst_32 = arith.constant dense<0.000000e+00> : vector<8x4xf32>
    %83 = tpu.matmul %82, %10, %cst_32 {dimension_numbers = #tpu.dot_dimension_numbers<[1], [0], [0], [1], [0, 0, 1, 1], [], []>} : vector<8x32xbf16>, vector<32x4xbf16>, vector<8x4xf32> -> vector<8x4xf32>
    %84 = arith.addf %83, %16 : vector<8x4xf32>
    %cst_33 = arith.constant 1.000000e-01 : f32
    %85 = vector.broadcast %cst_33 : f32 to vector<8x4xf32>
    %86 = arith.mulf %84, %85 : vector<8x4xf32>
    %87 = arith.addf %21, %86 : vector<8x4xf32>
    %88 = tpu.concatenate %50, %87 in 1 : vector<8x32xf32>, vector<8x4xf32> -> vector<8x36xf32>
    %89 = arith.truncf %88 : vector<8x36xf32> to vector<8x36xbf16>
    %cst_34 = arith.constant dense<0.000000e+00> : vector<8x128xf32>
    %90 = tpu.matmul %89, %7, %cst_34 {dimension_numbers = #tpu.dot_dimension_numbers<[1], [0], [0], [1], [0, 0, 1, 1], [], []>} : vector<8x36xbf16>, vector<36x128xbf16>, vector<8x128xf32> -> vector<8x128xf32>
    %91 = arith.addf %6, %90 : vector<8x128xf32>
    %92 = vector.extract_strided_slice %91 {offsets = [0, 0], sizes = [8, 32], strides = [1, 1]} : vector<8x128xf32> to vector<8x32xf32>
    %93 = arith.negf %92 : vector<8x32xf32>
    %94 = math.exp %93 : vector<8x32xf32>
    %cst_35 = arith.constant 1.000000e+00 : f32
    %95 = vector.broadcast %cst_35 : f32 to vector<8x32xf32>
    %96 = arith.addf %95, %94 : vector<8x32xf32>
    %97 = arith.divf %95, %96 : vector<8x32xf32>
    %98 = vector.extract_strided_slice %91 {offsets = [0, 32], sizes = [8, 32], strides = [1, 1]} : vector<8x128xf32> to vector<8x32xf32>
    %99 = arith.negf %98 : vector<8x32xf32>
    %100 = math.exp %99 : vector<8x32xf32>
    %cst_36 = arith.constant 1.000000e+00 : f32
    %101 = vector.broadcast %cst_36 : f32 to vector<8x32xf32>
    %102 = arith.addf %101, %100 : vector<8x32xf32>
    %103 = arith.divf %101, %102 : vector<8x32xf32>
    %104 = vector.extract_strided_slice %91 {offsets = [0, 64], sizes = [8, 32], strides = [1, 1]} : vector<8x128xf32> to vector<8x32xf32>
    %105 = math.tanh %104 : vector<8x32xf32>
    %106 = vector.extract_strided_slice %91 {offsets = [0, 96], sizes = [8, 32], strides = [1, 1]} : vector<8x128xf32> to vector<8x32xf32>
    %107 = arith.negf %106 : vector<8x32xf32>
    %108 = math.exp %107 : vector<8x32xf32>
    %cst_37 = arith.constant 1.000000e+00 : f32
    %109 = vector.broadcast %cst_37 : f32 to vector<8x32xf32>
    %110 = arith.addf %109, %108 : vector<8x32xf32>
    %111 = arith.divf %109, %110 : vector<8x32xf32>
    %112 = arith.mulf %103, %48 : vector<8x32xf32>
    %113 = arith.mulf %97, %105 : vector<8x32xf32>
    %114 = arith.addf %112, %113 : vector<8x32xf32>
    %115 = math.tanh %114 : vector<8x32xf32>
    %116 = arith.mulf %111, %115 : vector<8x32xf32>
    %117 = arith.truncf %116 : vector<8x32xf32> to vector<8x32xbf16>
    %cst_38 = arith.constant dense<0.000000e+00> : vector<8x128xf32>
    %118 = tpu.matmul %117, %8, %cst_38 {dimension_numbers = #tpu.dot_dimension_numbers<[1], [0], [0], [1], [0, 0, 1, 1], [], []>} : vector<8x32xbf16>, vector<32x128xbf16>, vector<8x128xf32> -> vector<8x128xf32>
    %119 = arith.truncf %81 : vector<8x32xf32> to vector<8x32xbf16>
    %cst_39 = arith.constant dense<0.000000e+00> : vector<8x128xf32>
    %120 = tpu.matmul %119, %9, %cst_39 {dimension_numbers = #tpu.dot_dimension_numbers<[1], [0], [0], [1], [0, 0, 1, 1], [], []>} : vector<8x32xbf16>, vector<32x128xbf16>, vector<8x128xf32> -> vector<8x128xf32>
    %121 = arith.addf %118, %120 : vector<8x128xf32>
    %122 = arith.addf %121, %13 : vector<8x128xf32>
    %123 = vector.extract_strided_slice %122 {offsets = [0, 0], sizes = [8, 32], strides = [1, 1]} : vector<8x128xf32> to vector<8x32xf32>
    %124 = arith.negf %123 : vector<8x32xf32>
    %125 = math.exp %124 : vector<8x32xf32>
    %cst_40 = arith.constant 1.000000e+00 : f32
    %126 = vector.broadcast %cst_40 : f32 to vector<8x32xf32>
    %127 = arith.addf %126, %125 : vector<8x32xf32>
    %128 = arith.divf %126, %127 : vector<8x32xf32>
    %129 = vector.extract_strided_slice %122 {offsets = [0, 32], sizes = [8, 32], strides = [1, 1]} : vector<8x128xf32> to vector<8x32xf32>
    %130 = arith.negf %129 : vector<8x32xf32>
    %131 = math.exp %130 : vector<8x32xf32>
    %cst_41 = arith.constant 1.000000e+00 : f32
    %132 = vector.broadcast %cst_41 : f32 to vector<8x32xf32>
    %133 = arith.addf %132, %131 : vector<8x32xf32>
    %134 = arith.divf %132, %133 : vector<8x32xf32>
    %135 = vector.extract_strided_slice %122 {offsets = [0, 64], sizes = [8, 32], strides = [1, 1]} : vector<8x128xf32> to vector<8x32xf32>
    %136 = math.tanh %135 : vector<8x32xf32>
    %137 = vector.extract_strided_slice %122 {offsets = [0, 96], sizes = [8, 32], strides = [1, 1]} : vector<8x128xf32> to vector<8x32xf32>
    %138 = arith.negf %137 : vector<8x32xf32>
    %139 = math.exp %138 : vector<8x32xf32>
    %cst_42 = arith.constant 1.000000e+00 : f32
    %140 = vector.broadcast %cst_42 : f32 to vector<8x32xf32>
    %141 = arith.addf %140, %139 : vector<8x32xf32>
    %142 = arith.divf %140, %141 : vector<8x32xf32>
    %143 = arith.mulf %134, %79 : vector<8x32xf32>
    %144 = arith.mulf %128, %136 : vector<8x32xf32>
    %145 = arith.addf %143, %144 : vector<8x32xf32>
    %146 = math.tanh %145 : vector<8x32xf32>
    %147 = arith.mulf %142, %146 : vector<8x32xf32>
    %148 = arith.truncf %147 : vector<8x32xf32> to vector<8x32xbf16>
    %cst_43 = arith.constant dense<0.000000e+00> : vector<8x4xf32>
    %149 = tpu.matmul %148, %10, %cst_43 {dimension_numbers = #tpu.dot_dimension_numbers<[1], [0], [0], [1], [0, 0, 1, 1], [], []>} : vector<8x32xbf16>, vector<32x4xbf16>, vector<8x4xf32> -> vector<8x4xf32>
    %150 = arith.addf %149, %16 : vector<8x4xf32>
    %cst_44 = arith.constant 1.000000e-01 : f32
    %151 = vector.broadcast %cst_44 : f32 to vector<8x4xf32>
    %152 = arith.mulf %150, %151 : vector<8x4xf32>
    %153 = arith.addf %87, %152 : vector<8x4xf32>
    %154 = tpu.concatenate %116, %153 in 1 : vector<8x32xf32>, vector<8x4xf32> -> vector<8x36xf32>
    %155 = arith.truncf %154 : vector<8x36xf32> to vector<8x36xbf16>
    %cst_45 = arith.constant dense<0.000000e+00> : vector<8x128xf32>
    %156 = tpu.matmul %155, %7, %cst_45 {dimension_numbers = #tpu.dot_dimension_numbers<[1], [0], [0], [1], [0, 0, 1, 1], [], []>} : vector<8x36xbf16>, vector<36x128xbf16>, vector<8x128xf32> -> vector<8x128xf32>
    %157 = arith.addf %6, %156 : vector<8x128xf32>
    %158 = vector.extract_strided_slice %157 {offsets = [0, 0], sizes = [8, 32], strides = [1, 1]} : vector<8x128xf32> to vector<8x32xf32>
    %159 = arith.negf %158 : vector<8x32xf32>
    %160 = math.exp %159 : vector<8x32xf32>
    %cst_46 = arith.constant 1.000000e+00 : f32
    %161 = vector.broadcast %cst_46 : f32 to vector<8x32xf32>
    %162 = arith.addf %161, %160 : vector<8x32xf32>
    %163 = arith.divf %161, %162 : vector<8x32xf32>
    %164 = vector.extract_strided_slice %157 {offsets = [0, 32], sizes = [8, 32], strides = [1, 1]} : vector<8x128xf32> to vector<8x32xf32>
    %165 = arith.negf %164 : vector<8x32xf32>
    %166 = math.exp %165 : vector<8x32xf32>
    %cst_47 = arith.constant 1.000000e+00 : f32
    %167 = vector.broadcast %cst_47 : f32 to vector<8x32xf32>
    %168 = arith.addf %167, %166 : vector<8x32xf32>
    %169 = arith.divf %167, %168 : vector<8x32xf32>
    %170 = vector.extract_strided_slice %157 {offsets = [0, 64], sizes = [8, 32], strides = [1, 1]} : vector<8x128xf32> to vector<8x32xf32>
    %171 = math.tanh %170 : vector<8x32xf32>
    %172 = vector.extract_strided_slice %157 {offsets = [0, 96], sizes = [8, 32], strides = [1, 1]} : vector<8x128xf32> to vector<8x32xf32>
    %173 = arith.negf %172 : vector<8x32xf32>
    %174 = math.exp %173 : vector<8x32xf32>
    %cst_48 = arith.constant 1.000000e+00 : f32
    %175 = vector.broadcast %cst_48 : f32 to vector<8x32xf32>
    %176 = arith.addf %175, %174 : vector<8x32xf32>
    %177 = arith.divf %175, %176 : vector<8x32xf32>
    %178 = arith.mulf %169, %114 : vector<8x32xf32>
    %179 = arith.mulf %163, %171 : vector<8x32xf32>
    %180 = arith.addf %178, %179 : vector<8x32xf32>
    %181 = math.tanh %180 : vector<8x32xf32>
    %182 = arith.mulf %177, %181 : vector<8x32xf32>
    %183 = arith.truncf %182 : vector<8x32xf32> to vector<8x32xbf16>
    %cst_49 = arith.constant dense<0.000000e+00> : vector<8x128xf32>
    %184 = tpu.matmul %183, %8, %cst_49 {dimension_numbers = #tpu.dot_dimension_numbers<[1], [0], [0], [1], [0, 0, 1, 1], [], []>} : vector<8x32xbf16>, vector<32x128xbf16>, vector<8x128xf32> -> vector<8x128xf32>
    %185 = arith.truncf %147 : vector<8x32xf32> to vector<8x32xbf16>
    %cst_50 = arith.constant dense<0.000000e+00> : vector<8x128xf32>
    %186 = tpu.matmul %185, %9, %cst_50 {dimension_numbers = #tpu.dot_dimension_numbers<[1], [0], [0], [1], [0, 0, 1, 1], [], []>} : vector<8x32xbf16>, vector<32x128xbf16>, vector<8x128xf32> -> vector<8x128xf32>
    %187 = arith.addf %184, %186 : vector<8x128xf32>
    %188 = arith.addf %187, %13 : vector<8x128xf32>
    %189 = vector.extract_strided_slice %188 {offsets = [0, 0], sizes = [8, 32], strides = [1, 1]} : vector<8x128xf32> to vector<8x32xf32>
    %190 = arith.negf %189 : vector<8x32xf32>
    %191 = math.exp %190 : vector<8x32xf32>
    %cst_51 = arith.constant 1.000000e+00 : f32
    %192 = vector.broadcast %cst_51 : f32 to vector<8x32xf32>
    %193 = arith.addf %192, %191 : vector<8x32xf32>
    %194 = arith.divf %192, %193 : vector<8x32xf32>
    %195 = vector.extract_strided_slice %188 {offsets = [0, 32], sizes = [8, 32], strides = [1, 1]} : vector<8x128xf32> to vector<8x32xf32>
    %196 = arith.negf %195 : vector<8x32xf32>
    %197 = math.exp %196 : vector<8x32xf32>
    %cst_52 = arith.constant 1.000000e+00 : f32
    %198 = vector.broadcast %cst_52 : f32 to vector<8x32xf32>
    %199 = arith.addf %198, %197 : vector<8x32xf32>
    %200 = arith.divf %198, %199 : vector<8x32xf32>
    %201 = vector.extract_strided_slice %188 {offsets = [0, 64], sizes = [8, 32], strides = [1, 1]} : vector<8x128xf32> to vector<8x32xf32>
    %202 = math.tanh %201 : vector<8x32xf32>
    %203 = vector.extract_strided_slice %188 {offsets = [0, 96], sizes = [8, 32], strides = [1, 1]} : vector<8x128xf32> to vector<8x32xf32>
    %204 = arith.negf %203 : vector<8x32xf32>
    %205 = math.exp %204 : vector<8x32xf32>
    %cst_53 = arith.constant 1.000000e+00 : f32
    %206 = vector.broadcast %cst_53 : f32 to vector<8x32xf32>
    %207 = arith.addf %206, %205 : vector<8x32xf32>
    %208 = arith.divf %206, %207 : vector<8x32xf32>
    %209 = arith.mulf %200, %145 : vector<8x32xf32>
    %210 = arith.mulf %194, %202 : vector<8x32xf32>
    %211 = arith.addf %209, %210 : vector<8x32xf32>
    %212 = math.tanh %211 : vector<8x32xf32>
    %213 = arith.mulf %208, %212 : vector<8x32xf32>
    %214 = arith.truncf %213 : vector<8x32xf32> to vector<8x32xbf16>
    %cst_54 = arith.constant dense<0.000000e+00> : vector<8x4xf32>
    %215 = tpu.matmul %214, %10, %cst_54 {dimension_numbers = #tpu.dot_dimension_numbers<[1], [0], [0], [1], [0, 0, 1, 1], [], []>} : vector<8x32xbf16>, vector<32x4xbf16>, vector<8x4xf32> -> vector<8x4xf32>
    %216 = arith.addf %215, %16 : vector<8x4xf32>
    %cst_55 = arith.constant 1.000000e-01 : f32
    %217 = vector.broadcast %cst_55 : f32 to vector<8x4xf32>
    %218 = arith.mulf %216, %217 : vector<8x4xf32>
    %219 = arith.addf %153, %218 : vector<8x4xf32>
    %220 = tpu.concatenate %182, %219 in 1 : vector<8x32xf32>, vector<8x4xf32> -> vector<8x36xf32>
    %221 = arith.truncf %220 : vector<8x36xf32> to vector<8x36xbf16>
    %cst_56 = arith.constant dense<0.000000e+00> : vector<8x128xf32>
    %222 = tpu.matmul %221, %7, %cst_56 {dimension_numbers = #tpu.dot_dimension_numbers<[1], [0], [0], [1], [0, 0, 1, 1], [], []>} : vector<8x36xbf16>, vector<36x128xbf16>, vector<8x128xf32> -> vector<8x128xf32>
    %223 = arith.addf %6, %222 : vector<8x128xf32>
    %224 = vector.extract_strided_slice %223 {offsets = [0, 0], sizes = [8, 32], strides = [1, 1]} : vector<8x128xf32> to vector<8x32xf32>
    %225 = arith.negf %224 : vector<8x32xf32>
    %226 = math.exp %225 : vector<8x32xf32>
    %cst_57 = arith.constant 1.000000e+00 : f32
    %227 = vector.broadcast %cst_57 : f32 to vector<8x32xf32>
    %228 = arith.addf %227, %226 : vector<8x32xf32>
    %229 = arith.divf %227, %228 : vector<8x32xf32>
    %230 = vector.extract_strided_slice %223 {offsets = [0, 32], sizes = [8, 32], strides = [1, 1]} : vector<8x128xf32> to vector<8x32xf32>
    %231 = arith.negf %230 : vector<8x32xf32>
    %232 = math.exp %231 : vector<8x32xf32>
    %cst_58 = arith.constant 1.000000e+00 : f32
    %233 = vector.broadcast %cst_58 : f32 to vector<8x32xf32>
    %234 = arith.addf %233, %232 : vector<8x32xf32>
    %235 = arith.divf %233, %234 : vector<8x32xf32>
    %236 = vector.extract_strided_slice %223 {offsets = [0, 64], sizes = [8, 32], strides = [1, 1]} : vector<8x128xf32> to vector<8x32xf32>
    %237 = math.tanh %236 : vector<8x32xf32>
    %238 = vector.extract_strided_slice %223 {offsets = [0, 96], sizes = [8, 32], strides = [1, 1]} : vector<8x128xf32> to vector<8x32xf32>
    %239 = arith.negf %238 : vector<8x32xf32>
    %240 = math.exp %239 : vector<8x32xf32>
    %cst_59 = arith.constant 1.000000e+00 : f32
    %241 = vector.broadcast %cst_59 : f32 to vector<8x32xf32>
    %242 = arith.addf %241, %240 : vector<8x32xf32>
    %243 = arith.divf %241, %242 : vector<8x32xf32>
    %244 = arith.mulf %235, %180 : vector<8x32xf32>
    %245 = arith.mulf %229, %237 : vector<8x32xf32>
    %246 = arith.addf %244, %245 : vector<8x32xf32>
    %247 = math.tanh %246 : vector<8x32xf32>
    %248 = arith.mulf %243, %247 : vector<8x32xf32>
    %249 = arith.truncf %248 : vector<8x32xf32> to vector<8x32xbf16>
    %cst_60 = arith.constant dense<0.000000e+00> : vector<8x128xf32>
    %250 = tpu.matmul %249, %8, %cst_60 {dimension_numbers = #tpu.dot_dimension_numbers<[1], [0], [0], [1], [0, 0, 1, 1], [], []>} : vector<8x32xbf16>, vector<32x128xbf16>, vector<8x128xf32> -> vector<8x128xf32>
    %251 = arith.truncf %213 : vector<8x32xf32> to vector<8x32xbf16>
    %cst_61 = arith.constant dense<0.000000e+00> : vector<8x128xf32>
    %252 = tpu.matmul %251, %9, %cst_61 {dimension_numbers = #tpu.dot_dimension_numbers<[1], [0], [0], [1], [0, 0, 1, 1], [], []>} : vector<8x32xbf16>, vector<32x128xbf16>, vector<8x128xf32> -> vector<8x128xf32>
    %253 = arith.addf %250, %252 : vector<8x128xf32>
    %254 = arith.addf %253, %13 : vector<8x128xf32>
    %255 = vector.extract_strided_slice %254 {offsets = [0, 0], sizes = [8, 32], strides = [1, 1]} : vector<8x128xf32> to vector<8x32xf32>
    %256 = arith.negf %255 : vector<8x32xf32>
    %257 = math.exp %256 : vector<8x32xf32>
    %cst_62 = arith.constant 1.000000e+00 : f32
    %258 = vector.broadcast %cst_62 : f32 to vector<8x32xf32>
    %259 = arith.addf %258, %257 : vector<8x32xf32>
    %260 = arith.divf %258, %259 : vector<8x32xf32>
    %261 = vector.extract_strided_slice %254 {offsets = [0, 32], sizes = [8, 32], strides = [1, 1]} : vector<8x128xf32> to vector<8x32xf32>
    %262 = arith.negf %261 : vector<8x32xf32>
    %263 = math.exp %262 : vector<8x32xf32>
    %cst_63 = arith.constant 1.000000e+00 : f32
    %264 = vector.broadcast %cst_63 : f32 to vector<8x32xf32>
    %265 = arith.addf %264, %263 : vector<8x32xf32>
    %266 = arith.divf %264, %265 : vector<8x32xf32>
    %267 = vector.extract_strided_slice %254 {offsets = [0, 64], sizes = [8, 32], strides = [1, 1]} : vector<8x128xf32> to vector<8x32xf32>
    %268 = math.tanh %267 : vector<8x32xf32>
    %269 = vector.extract_strided_slice %254 {offsets = [0, 96], sizes = [8, 32], strides = [1, 1]} : vector<8x128xf32> to vector<8x32xf32>
    %270 = arith.negf %269 : vector<8x32xf32>
    %271 = math.exp %270 : vector<8x32xf32>
    %cst_64 = arith.constant 1.000000e+00 : f32
    %272 = vector.broadcast %cst_64 : f32 to vector<8x32xf32>
    %273 = arith.addf %272, %271 : vector<8x32xf32>
    %274 = arith.divf %272, %273 : vector<8x32xf32>
    %275 = arith.mulf %266, %211 : vector<8x32xf32>
    %276 = arith.mulf %260, %268 : vector<8x32xf32>
    %277 = arith.addf %275, %276 : vector<8x32xf32>
    %278 = math.tanh %277 : vector<8x32xf32>
    %279 = arith.mulf %274, %278 : vector<8x32xf32>
    %280 = arith.truncf %279 : vector<8x32xf32> to vector<8x32xbf16>
    %cst_65 = arith.constant dense<0.000000e+00> : vector<8x4xf32>
    %281 = tpu.matmul %280, %10, %cst_65 {dimension_numbers = #tpu.dot_dimension_numbers<[1], [0], [0], [1], [0, 0, 1, 1], [], []>} : vector<8x32xbf16>, vector<32x4xbf16>, vector<8x4xf32> -> vector<8x4xf32>
    %282 = arith.addf %281, %16 : vector<8x4xf32>
    %cst_66 = arith.constant 1.000000e-01 : f32
    %283 = vector.broadcast %cst_66 : f32 to vector<8x4xf32>
    %284 = arith.mulf %282, %283 : vector<8x4xf32>
    %285 = arith.addf %219, %284 : vector<8x4xf32>
    %286 = tpu.concatenate %248, %285 in 1 : vector<8x32xf32>, vector<8x4xf32> -> vector<8x36xf32>
    %287 = arith.truncf %286 : vector<8x36xf32> to vector<8x36xbf16>
    %cst_67 = arith.constant dense<0.000000e+00> : vector<8x128xf32>
    %288 = tpu.matmul %287, %7, %cst_67 {dimension_numbers = #tpu.dot_dimension_numbers<[1], [0], [0], [1], [0, 0, 1, 1], [], []>} : vector<8x36xbf16>, vector<36x128xbf16>, vector<8x128xf32> -> vector<8x128xf32>
    %289 = arith.addf %6, %288 : vector<8x128xf32>
    %290 = vector.extract_strided_slice %289 {offsets = [0, 0], sizes = [8, 32], strides = [1, 1]} : vector<8x128xf32> to vector<8x32xf32>
    %291 = arith.negf %290 : vector<8x32xf32>
    %292 = math.exp %291 : vector<8x32xf32>
    %cst_68 = arith.constant 1.000000e+00 : f32
    %293 = vector.broadcast %cst_68 : f32 to vector<8x32xf32>
    %294 = arith.addf %293, %292 : vector<8x32xf32>
    %295 = arith.divf %293, %294 : vector<8x32xf32>
    %296 = vector.extract_strided_slice %289 {offsets = [0, 32], sizes = [8, 32], strides = [1, 1]} : vector<8x128xf32> to vector<8x32xf32>
    %297 = arith.negf %296 : vector<8x32xf32>
    %298 = math.exp %297 : vector<8x32xf32>
    %cst_69 = arith.constant 1.000000e+00 : f32
    %299 = vector.broadcast %cst_69 : f32 to vector<8x32xf32>
    %300 = arith.addf %299, %298 : vector<8x32xf32>
    %301 = arith.divf %299, %300 : vector<8x32xf32>
    %302 = vector.extract_strided_slice %289 {offsets = [0, 64], sizes = [8, 32], strides = [1, 1]} : vector<8x128xf32> to vector<8x32xf32>
    %303 = math.tanh %302 : vector<8x32xf32>
    %304 = vector.extract_strided_slice %289 {offsets = [0, 96], sizes = [8, 32], strides = [1, 1]} : vector<8x128xf32> to vector<8x32xf32>
    %305 = arith.negf %304 : vector<8x32xf32>
    %306 = math.exp %305 : vector<8x32xf32>
    %cst_70 = arith.constant 1.000000e+00 : f32
    %307 = vector.broadcast %cst_70 : f32 to vector<8x32xf32>
    %308 = arith.addf %307, %306 : vector<8x32xf32>
    %309 = arith.divf %307, %308 : vector<8x32xf32>
    %310 = arith.mulf %301, %246 : vector<8x32xf32>
    %311 = arith.mulf %295, %303 : vector<8x32xf32>
    %312 = arith.addf %310, %311 : vector<8x32xf32>
    %313 = math.tanh %312 : vector<8x32xf32>
    %314 = arith.mulf %309, %313 : vector<8x32xf32>
    %315 = arith.truncf %314 : vector<8x32xf32> to vector<8x32xbf16>
    %cst_71 = arith.constant dense<0.000000e+00> : vector<8x128xf32>
    %316 = tpu.matmul %315, %8, %cst_71 {dimension_numbers = #tpu.dot_dimension_numbers<[1], [0], [0], [1], [0, 0, 1, 1], [], []>} : vector<8x32xbf16>, vector<32x128xbf16>, vector<8x128xf32> -> vector<8x128xf32>
    %317 = arith.truncf %279 : vector<8x32xf32> to vector<8x32xbf16>
    %cst_72 = arith.constant dense<0.000000e+00> : vector<8x128xf32>
    %318 = tpu.matmul %317, %9, %cst_72 {dimension_numbers = #tpu.dot_dimension_numbers<[1], [0], [0], [1], [0, 0, 1, 1], [], []>} : vector<8x32xbf16>, vector<32x128xbf16>, vector<8x128xf32> -> vector<8x128xf32>
    %319 = arith.addf %316, %318 : vector<8x128xf32>
    %320 = arith.addf %319, %13 : vector<8x128xf32>
    %321 = vector.extract_strided_slice %320 {offsets = [0, 0], sizes = [8, 32], strides = [1, 1]} : vector<8x128xf32> to vector<8x32xf32>
    %322 = arith.negf %321 : vector<8x32xf32>
    %323 = math.exp %322 : vector<8x32xf32>
    %cst_73 = arith.constant 1.000000e+00 : f32
    %324 = vector.broadcast %cst_73 : f32 to vector<8x32xf32>
    %325 = arith.addf %324, %323 : vector<8x32xf32>
    %326 = arith.divf %324, %325 : vector<8x32xf32>
    %327 = vector.extract_strided_slice %320 {offsets = [0, 32], sizes = [8, 32], strides = [1, 1]} : vector<8x128xf32> to vector<8x32xf32>
    %328 = arith.negf %327 : vector<8x32xf32>
    %329 = math.exp %328 : vector<8x32xf32>
    %cst_74 = arith.constant 1.000000e+00 : f32
    %330 = vector.broadcast %cst_74 : f32 to vector<8x32xf32>
    %331 = arith.addf %330, %329 : vector<8x32xf32>
    %332 = arith.divf %330, %331 : vector<8x32xf32>
    %333 = vector.extract_strided_slice %320 {offsets = [0, 64], sizes = [8, 32], strides = [1, 1]} : vector<8x128xf32> to vector<8x32xf32>
    %334 = math.tanh %333 : vector<8x32xf32>
    %335 = vector.extract_strided_slice %320 {offsets = [0, 96], sizes = [8, 32], strides = [1, 1]} : vector<8x128xf32> to vector<8x32xf32>
    %336 = arith.negf %335 : vector<8x32xf32>
    %337 = math.exp %336 : vector<8x32xf32>
    %cst_75 = arith.constant 1.000000e+00 : f32
    %338 = vector.broadcast %cst_75 : f32 to vector<8x32xf32>
    %339 = arith.addf %338, %337 : vector<8x32xf32>
    %340 = arith.divf %338, %339 : vector<8x32xf32>
    %341 = arith.mulf %332, %277 : vector<8x32xf32>
    %342 = arith.mulf %326, %334 : vector<8x32xf32>
    %343 = arith.addf %341, %342 : vector<8x32xf32>
    %344 = math.tanh %343 : vector<8x32xf32>
    %345 = arith.mulf %340, %344 : vector<8x32xf32>
    %346 = arith.truncf %345 : vector<8x32xf32> to vector<8x32xbf16>
    %cst_76 = arith.constant dense<0.000000e+00> : vector<8x4xf32>
    %347 = tpu.matmul %346, %10, %cst_76 {dimension_numbers = #tpu.dot_dimension_numbers<[1], [0], [0], [1], [0, 0, 1, 1], [], []>} : vector<8x32xbf16>, vector<32x4xbf16>, vector<8x4xf32> -> vector<8x4xf32>
    %348 = arith.addf %347, %16 : vector<8x4xf32>
    %cst_77 = arith.constant 1.000000e-01 : f32
    %349 = vector.broadcast %cst_77 : f32 to vector<8x4xf32>
    %350 = arith.mulf %348, %349 : vector<8x4xf32>
    %351 = arith.addf %285, %350 : vector<8x4xf32>
    %352 = tpu.concatenate %314, %351 in 1 : vector<8x32xf32>, vector<8x4xf32> -> vector<8x36xf32>
    %353 = arith.truncf %352 : vector<8x36xf32> to vector<8x36xbf16>
    %cst_78 = arith.constant dense<0.000000e+00> : vector<8x128xf32>
    %354 = tpu.matmul %353, %7, %cst_78 {dimension_numbers = #tpu.dot_dimension_numbers<[1], [0], [0], [1], [0, 0, 1, 1], [], []>} : vector<8x36xbf16>, vector<36x128xbf16>, vector<8x128xf32> -> vector<8x128xf32>
    %355 = arith.addf %6, %354 : vector<8x128xf32>
    %356 = vector.extract_strided_slice %355 {offsets = [0, 0], sizes = [8, 32], strides = [1, 1]} : vector<8x128xf32> to vector<8x32xf32>
    %357 = arith.negf %356 : vector<8x32xf32>
    %358 = math.exp %357 : vector<8x32xf32>
    %cst_79 = arith.constant 1.000000e+00 : f32
    %359 = vector.broadcast %cst_79 : f32 to vector<8x32xf32>
    %360 = arith.addf %359, %358 : vector<8x32xf32>
    %361 = arith.divf %359, %360 : vector<8x32xf32>
    %362 = vector.extract_strided_slice %355 {offsets = [0, 32], sizes = [8, 32], strides = [1, 1]} : vector<8x128xf32> to vector<8x32xf32>
    %363 = arith.negf %362 : vector<8x32xf32>
    %364 = math.exp %363 : vector<8x32xf32>
    %cst_80 = arith.constant 1.000000e+00 : f32
    %365 = vector.broadcast %cst_80 : f32 to vector<8x32xf32>
    %366 = arith.addf %365, %364 : vector<8x32xf32>
    %367 = arith.divf %365, %366 : vector<8x32xf32>
    %368 = vector.extract_strided_slice %355 {offsets = [0, 64], sizes = [8, 32], strides = [1, 1]} : vector<8x128xf32> to vector<8x32xf32>
    %369 = math.tanh %368 : vector<8x32xf32>
    %370 = vector.extract_strided_slice %355 {offsets = [0, 96], sizes = [8, 32], strides = [1, 1]} : vector<8x128xf32> to vector<8x32xf32>
    %371 = arith.negf %370 : vector<8x32xf32>
    %372 = math.exp %371 : vector<8x32xf32>
    %cst_81 = arith.constant 1.000000e+00 : f32
    %373 = vector.broadcast %cst_81 : f32 to vector<8x32xf32>
    %374 = arith.addf %373, %372 : vector<8x32xf32>
    %375 = arith.divf %373, %374 : vector<8x32xf32>
    %376 = arith.mulf %367, %312 : vector<8x32xf32>
    %377 = arith.mulf %361, %369 : vector<8x32xf32>
    %378 = arith.addf %376, %377 : vector<8x32xf32>
    %379 = math.tanh %378 : vector<8x32xf32>
    %380 = arith.mulf %375, %379 : vector<8x32xf32>
    %381 = arith.truncf %380 : vector<8x32xf32> to vector<8x32xbf16>
    %cst_82 = arith.constant dense<0.000000e+00> : vector<8x128xf32>
    %382 = tpu.matmul %381, %8, %cst_82 {dimension_numbers = #tpu.dot_dimension_numbers<[1], [0], [0], [1], [0, 0, 1, 1], [], []>} : vector<8x32xbf16>, vector<32x128xbf16>, vector<8x128xf32> -> vector<8x128xf32>
    %383 = arith.truncf %345 : vector<8x32xf32> to vector<8x32xbf16>
    %cst_83 = arith.constant dense<0.000000e+00> : vector<8x128xf32>
    %384 = tpu.matmul %383, %9, %cst_83 {dimension_numbers = #tpu.dot_dimension_numbers<[1], [0], [0], [1], [0, 0, 1, 1], [], []>} : vector<8x32xbf16>, vector<32x128xbf16>, vector<8x128xf32> -> vector<8x128xf32>
    %385 = arith.addf %382, %384 : vector<8x128xf32>
    %386 = arith.addf %385, %13 : vector<8x128xf32>
    %387 = vector.extract_strided_slice %386 {offsets = [0, 0], sizes = [8, 32], strides = [1, 1]} : vector<8x128xf32> to vector<8x32xf32>
    %388 = arith.negf %387 : vector<8x32xf32>
    %389 = math.exp %388 : vector<8x32xf32>
    %cst_84 = arith.constant 1.000000e+00 : f32
    %390 = vector.broadcast %cst_84 : f32 to vector<8x32xf32>
    %391 = arith.addf %390, %389 : vector<8x32xf32>
    %392 = arith.divf %390, %391 : vector<8x32xf32>
    %393 = vector.extract_strided_slice %386 {offsets = [0, 32], sizes = [8, 32], strides = [1, 1]} : vector<8x128xf32> to vector<8x32xf32>
    %394 = arith.negf %393 : vector<8x32xf32>
    %395 = math.exp %394 : vector<8x32xf32>
    %cst_85 = arith.constant 1.000000e+00 : f32
    %396 = vector.broadcast %cst_85 : f32 to vector<8x32xf32>
    %397 = arith.addf %396, %395 : vector<8x32xf32>
    %398 = arith.divf %396, %397 : vector<8x32xf32>
    %399 = vector.extract_strided_slice %386 {offsets = [0, 64], sizes = [8, 32], strides = [1, 1]} : vector<8x128xf32> to vector<8x32xf32>
    %400 = math.tanh %399 : vector<8x32xf32>
    %401 = vector.extract_strided_slice %386 {offsets = [0, 96], sizes = [8, 32], strides = [1, 1]} : vector<8x128xf32> to vector<8x32xf32>
    %402 = arith.negf %401 : vector<8x32xf32>
    %403 = math.exp %402 : vector<8x32xf32>
    %cst_86 = arith.constant 1.000000e+00 : f32
    %404 = vector.broadcast %cst_86 : f32 to vector<8x32xf32>
    %405 = arith.addf %404, %403 : vector<8x32xf32>
    %406 = arith.divf %404, %405 : vector<8x32xf32>
    %407 = arith.mulf %398, %343 : vector<8x32xf32>
    %408 = arith.mulf %392, %400 : vector<8x32xf32>
    %409 = arith.addf %407, %408 : vector<8x32xf32>
    %410 = math.tanh %409 : vector<8x32xf32>
    %411 = arith.mulf %406, %410 : vector<8x32xf32>
    %412 = arith.truncf %411 : vector<8x32xf32> to vector<8x32xbf16>
    %cst_87 = arith.constant dense<0.000000e+00> : vector<8x4xf32>
    %413 = tpu.matmul %412, %10, %cst_87 {dimension_numbers = #tpu.dot_dimension_numbers<[1], [0], [0], [1], [0, 0, 1, 1], [], []>} : vector<8x32xbf16>, vector<32x4xbf16>, vector<8x4xf32> -> vector<8x4xf32>
    %414 = arith.addf %413, %16 : vector<8x4xf32>
    %cst_88 = arith.constant 1.000000e-01 : f32
    %415 = vector.broadcast %cst_88 : f32 to vector<8x4xf32>
    %416 = arith.mulf %414, %415 : vector<8x4xf32>
    %417 = arith.addf %351, %416 : vector<8x4xf32>
    %418 = tpu.concatenate %380, %417 in 1 : vector<8x32xf32>, vector<8x4xf32> -> vector<8x36xf32>
    %419 = arith.truncf %418 : vector<8x36xf32> to vector<8x36xbf16>
    %cst_89 = arith.constant dense<0.000000e+00> : vector<8x128xf32>
    %420 = tpu.matmul %419, %7, %cst_89 {dimension_numbers = #tpu.dot_dimension_numbers<[1], [0], [0], [1], [0, 0, 1, 1], [], []>} : vector<8x36xbf16>, vector<36x128xbf16>, vector<8x128xf32> -> vector<8x128xf32>
    %421 = arith.addf %6, %420 : vector<8x128xf32>
    %422 = vector.extract_strided_slice %421 {offsets = [0, 0], sizes = [8, 32], strides = [1, 1]} : vector<8x128xf32> to vector<8x32xf32>
    %423 = arith.negf %422 : vector<8x32xf32>
    %424 = math.exp %423 : vector<8x32xf32>
    %cst_90 = arith.constant 1.000000e+00 : f32
    %425 = vector.broadcast %cst_90 : f32 to vector<8x32xf32>
    %426 = arith.addf %425, %424 : vector<8x32xf32>
    %427 = arith.divf %425, %426 : vector<8x32xf32>
    %428 = vector.extract_strided_slice %421 {offsets = [0, 32], sizes = [8, 32], strides = [1, 1]} : vector<8x128xf32> to vector<8x32xf32>
    %429 = arith.negf %428 : vector<8x32xf32>
    %430 = math.exp %429 : vector<8x32xf32>
    %cst_91 = arith.constant 1.000000e+00 : f32
    %431 = vector.broadcast %cst_91 : f32 to vector<8x32xf32>
    %432 = arith.addf %431, %430 : vector<8x32xf32>
    %433 = arith.divf %431, %432 : vector<8x32xf32>
    %434 = vector.extract_strided_slice %421 {offsets = [0, 64], sizes = [8, 32], strides = [1, 1]} : vector<8x128xf32> to vector<8x32xf32>
    %435 = math.tanh %434 : vector<8x32xf32>
    %436 = vector.extract_strided_slice %421 {offsets = [0, 96], sizes = [8, 32], strides = [1, 1]} : vector<8x128xf32> to vector<8x32xf32>
    %437 = arith.negf %436 : vector<8x32xf32>
    %438 = math.exp %437 : vector<8x32xf32>
    %cst_92 = arith.constant 1.000000e+00 : f32
    %439 = vector.broadcast %cst_92 : f32 to vector<8x32xf32>
    %440 = arith.addf %439, %438 : vector<8x32xf32>
    %441 = arith.divf %439, %440 : vector<8x32xf32>
    %442 = arith.mulf %433, %378 : vector<8x32xf32>
    %443 = arith.mulf %427, %435 : vector<8x32xf32>
    %444 = arith.addf %442, %443 : vector<8x32xf32>
    %445 = math.tanh %444 : vector<8x32xf32>
    %446 = arith.mulf %441, %445 : vector<8x32xf32>
    %447 = arith.truncf %446 : vector<8x32xf32> to vector<8x32xbf16>
    %cst_93 = arith.constant dense<0.000000e+00> : vector<8x128xf32>
    %448 = tpu.matmul %447, %8, %cst_93 {dimension_numbers = #tpu.dot_dimension_numbers<[1], [0], [0], [1], [0, 0, 1, 1], [], []>} : vector<8x32xbf16>, vector<32x128xbf16>, vector<8x128xf32> -> vector<8x128xf32>
    %449 = arith.truncf %411 : vector<8x32xf32> to vector<8x32xbf16>
    %cst_94 = arith.constant dense<0.000000e+00> : vector<8x128xf32>
    %450 = tpu.matmul %449, %9, %cst_94 {dimension_numbers = #tpu.dot_dimension_numbers<[1], [0], [0], [1], [0, 0, 1, 1], [], []>} : vector<8x32xbf16>, vector<32x128xbf16>, vector<8x128xf32> -> vector<8x128xf32>
    %451 = arith.addf %448, %450 : vector<8x128xf32>
    %452 = arith.addf %451, %13 : vector<8x128xf32>
    %453 = vector.extract_strided_slice %452 {offsets = [0, 0], sizes = [8, 32], strides = [1, 1]} : vector<8x128xf32> to vector<8x32xf32>
    %454 = arith.negf %453 : vector<8x32xf32>
    %455 = math.exp %454 : vector<8x32xf32>
    %cst_95 = arith.constant 1.000000e+00 : f32
    %456 = vector.broadcast %cst_95 : f32 to vector<8x32xf32>
    %457 = arith.addf %456, %455 : vector<8x32xf32>
    %458 = arith.divf %456, %457 : vector<8x32xf32>
    %459 = vector.extract_strided_slice %452 {offsets = [0, 32], sizes = [8, 32], strides = [1, 1]} : vector<8x128xf32> to vector<8x32xf32>
    %460 = arith.negf %459 : vector<8x32xf32>
    %461 = math.exp %460 : vector<8x32xf32>
    %cst_96 = arith.constant 1.000000e+00 : f32
    %462 = vector.broadcast %cst_96 : f32 to vector<8x32xf32>
    %463 = arith.addf %462, %461 : vector<8x32xf32>
    %464 = arith.divf %462, %463 : vector<8x32xf32>
    %465 = vector.extract_strided_slice %452 {offsets = [0, 64], sizes = [8, 32], strides = [1, 1]} : vector<8x128xf32> to vector<8x32xf32>
    %466 = math.tanh %465 : vector<8x32xf32>
    %467 = vector.extract_strided_slice %452 {offsets = [0, 96], sizes = [8, 32], strides = [1, 1]} : vector<8x128xf32> to vector<8x32xf32>
    %468 = arith.negf %467 : vector<8x32xf32>
    %469 = math.exp %468 : vector<8x32xf32>
    %cst_97 = arith.constant 1.000000e+00 : f32
    %470 = vector.broadcast %cst_97 : f32 to vector<8x32xf32>
    %471 = arith.addf %470, %469 : vector<8x32xf32>
    %472 = arith.divf %470, %471 : vector<8x32xf32>
    %473 = arith.mulf %464, %409 : vector<8x32xf32>
    %474 = arith.mulf %458, %466 : vector<8x32xf32>
    %475 = arith.addf %473, %474 : vector<8x32xf32>
    %476 = math.tanh %475 : vector<8x32xf32>
    %477 = arith.mulf %472, %476 : vector<8x32xf32>
    %478 = arith.truncf %477 : vector<8x32xf32> to vector<8x32xbf16>
    %cst_98 = arith.constant dense<0.000000e+00> : vector<8x4xf32>
    %479 = tpu.matmul %478, %10, %cst_98 {dimension_numbers = #tpu.dot_dimension_numbers<[1], [0], [0], [1], [0, 0, 1, 1], [], []>} : vector<8x32xbf16>, vector<32x4xbf16>, vector<8x4xf32> -> vector<8x4xf32>
    %480 = arith.addf %479, %16 : vector<8x4xf32>
    %cst_99 = arith.constant 1.000000e-01 : f32
    %481 = vector.broadcast %cst_99 : f32 to vector<8x4xf32>
    %482 = arith.mulf %480, %481 : vector<8x4xf32>
    %483 = arith.addf %417, %482 : vector<8x4xf32>
    %484 = tpu.concatenate %446, %483 in 1 : vector<8x32xf32>, vector<8x4xf32> -> vector<8x36xf32>
    %485 = arith.truncf %484 : vector<8x36xf32> to vector<8x36xbf16>
    %cst_100 = arith.constant dense<0.000000e+00> : vector<8x128xf32>
    %486 = tpu.matmul %485, %7, %cst_100 {dimension_numbers = #tpu.dot_dimension_numbers<[1], [0], [0], [1], [0, 0, 1, 1], [], []>} : vector<8x36xbf16>, vector<36x128xbf16>, vector<8x128xf32> -> vector<8x128xf32>
    %487 = arith.addf %6, %486 : vector<8x128xf32>
    %488 = vector.extract_strided_slice %487 {offsets = [0, 0], sizes = [8, 32], strides = [1, 1]} : vector<8x128xf32> to vector<8x32xf32>
    %489 = arith.negf %488 : vector<8x32xf32>
    %490 = math.exp %489 : vector<8x32xf32>
    %cst_101 = arith.constant 1.000000e+00 : f32
    %491 = vector.broadcast %cst_101 : f32 to vector<8x32xf32>
    %492 = arith.addf %491, %490 : vector<8x32xf32>
    %493 = arith.divf %491, %492 : vector<8x32xf32>
    %494 = vector.extract_strided_slice %487 {offsets = [0, 32], sizes = [8, 32], strides = [1, 1]} : vector<8x128xf32> to vector<8x32xf32>
    %495 = arith.negf %494 : vector<8x32xf32>
    %496 = math.exp %495 : vector<8x32xf32>
    %cst_102 = arith.constant 1.000000e+00 : f32
    %497 = vector.broadcast %cst_102 : f32 to vector<8x32xf32>
    %498 = arith.addf %497, %496 : vector<8x32xf32>
    %499 = arith.divf %497, %498 : vector<8x32xf32>
    %500 = vector.extract_strided_slice %487 {offsets = [0, 64], sizes = [8, 32], strides = [1, 1]} : vector<8x128xf32> to vector<8x32xf32>
    %501 = math.tanh %500 : vector<8x32xf32>
    %502 = vector.extract_strided_slice %487 {offsets = [0, 96], sizes = [8, 32], strides = [1, 1]} : vector<8x128xf32> to vector<8x32xf32>
    %503 = arith.negf %502 : vector<8x32xf32>
    %504 = math.exp %503 : vector<8x32xf32>
    %cst_103 = arith.constant 1.000000e+00 : f32
    %505 = vector.broadcast %cst_103 : f32 to vector<8x32xf32>
    %506 = arith.addf %505, %504 : vector<8x32xf32>
    %507 = arith.divf %505, %506 : vector<8x32xf32>
    %508 = arith.mulf %499, %444 : vector<8x32xf32>
    %509 = arith.mulf %493, %501 : vector<8x32xf32>
    %510 = arith.addf %508, %509 : vector<8x32xf32>
    %511 = math.tanh %510 : vector<8x32xf32>
    %512 = arith.mulf %507, %511 : vector<8x32xf32>
    %513 = arith.truncf %512 : vector<8x32xf32> to vector<8x32xbf16>
    %cst_104 = arith.constant dense<0.000000e+00> : vector<8x128xf32>
    %514 = tpu.matmul %513, %8, %cst_104 {dimension_numbers = #tpu.dot_dimension_numbers<[1], [0], [0], [1], [0, 0, 1, 1], [], []>} : vector<8x32xbf16>, vector<32x128xbf16>, vector<8x128xf32> -> vector<8x128xf32>
    %515 = arith.truncf %477 : vector<8x32xf32> to vector<8x32xbf16>
    %cst_105 = arith.constant dense<0.000000e+00> : vector<8x128xf32>
    %516 = tpu.matmul %515, %9, %cst_105 {dimension_numbers = #tpu.dot_dimension_numbers<[1], [0], [0], [1], [0, 0, 1, 1], [], []>} : vector<8x32xbf16>, vector<32x128xbf16>, vector<8x128xf32> -> vector<8x128xf32>
    %517 = arith.addf %514, %516 : vector<8x128xf32>
    %518 = arith.addf %517, %13 : vector<8x128xf32>
    %519 = vector.extract_strided_slice %518 {offsets = [0, 0], sizes = [8, 32], strides = [1, 1]} : vector<8x128xf32> to vector<8x32xf32>
    %520 = arith.negf %519 : vector<8x32xf32>
    %521 = math.exp %520 : vector<8x32xf32>
    %cst_106 = arith.constant 1.000000e+00 : f32
    %522 = vector.broadcast %cst_106 : f32 to vector<8x32xf32>
    %523 = arith.addf %522, %521 : vector<8x32xf32>
    %524 = arith.divf %522, %523 : vector<8x32xf32>
    %525 = vector.extract_strided_slice %518 {offsets = [0, 32], sizes = [8, 32], strides = [1, 1]} : vector<8x128xf32> to vector<8x32xf32>
    %526 = arith.negf %525 : vector<8x32xf32>
    %527 = math.exp %526 : vector<8x32xf32>
    %cst_107 = arith.constant 1.000000e+00 : f32
    %528 = vector.broadcast %cst_107 : f32 to vector<8x32xf32>
    %529 = arith.addf %528, %527 : vector<8x32xf32>
    %530 = arith.divf %528, %529 : vector<8x32xf32>
    %531 = vector.extract_strided_slice %518 {offsets = [0, 64], sizes = [8, 32], strides = [1, 1]} : vector<8x128xf32> to vector<8x32xf32>
    %532 = math.tanh %531 : vector<8x32xf32>
    %533 = vector.extract_strided_slice %518 {offsets = [0, 96], sizes = [8, 32], strides = [1, 1]} : vector<8x128xf32> to vector<8x32xf32>
    %534 = arith.negf %533 : vector<8x32xf32>
    %535 = math.exp %534 : vector<8x32xf32>
    %cst_108 = arith.constant 1.000000e+00 : f32
    %536 = vector.broadcast %cst_108 : f32 to vector<8x32xf32>
    %537 = arith.addf %536, %535 : vector<8x32xf32>
    %538 = arith.divf %536, %537 : vector<8x32xf32>
    %539 = arith.mulf %530, %475 : vector<8x32xf32>
    %540 = arith.mulf %524, %532 : vector<8x32xf32>
    %541 = arith.addf %539, %540 : vector<8x32xf32>
    %542 = math.tanh %541 : vector<8x32xf32>
    %543 = arith.mulf %538, %542 : vector<8x32xf32>
    %544 = arith.truncf %543 : vector<8x32xf32> to vector<8x32xbf16>
    %cst_109 = arith.constant dense<0.000000e+00> : vector<8x4xf32>
    %545 = tpu.matmul %544, %10, %cst_109 {dimension_numbers = #tpu.dot_dimension_numbers<[1], [0], [0], [1], [0, 0, 1, 1], [], []>} : vector<8x32xbf16>, vector<32x4xbf16>, vector<8x4xf32> -> vector<8x4xf32>
    %546 = arith.addf %545, %16 : vector<8x4xf32>
    %cst_110 = arith.constant 1.000000e-01 : f32
    %547 = vector.broadcast %cst_110 : f32 to vector<8x4xf32>
    %548 = arith.mulf %546, %547 : vector<8x4xf32>
    %549 = arith.addf %483, %548 : vector<8x4xf32>
    %550 = tpu.concatenate %87, %153, %219, %285, %351, %417, %483, %549, %84, %150, %216, %282, %348, %414, %480, %546 in 1 : vector<8x4xf32>, vector<8x4xf32>, vector<8x4xf32>, vector<8x4xf32>, vector<8x4xf32>, vector<8x4xf32>, vector<8x4xf32>, vector<8x4xf32>, vector<8x4xf32>, vector<8x4xf32>, vector<8x4xf32>, vector<8x4xf32>, vector<8x4xf32>, vector<8x4xf32>, vector<8x4xf32>, vector<8x4xf32> -> vector<8x64xf32>
    %c0_111 = arith.constant 0 : index
    %c0_112 = arith.constant 0 : index
    %551 = vector.load %arg10[%c0_111, %c0_112] : memref<8x64xf32, #tpu.memory_space<vmem>>, vector<8x64xf32>
    tpu.vector_store %arg10[%c0_111, %c0_112], %550 {strides = array<i32>} : memref<8x64xf32, #tpu.memory_space<vmem>>, vector<8x64xf32>,
    return
  }
}

</mosaic_0001>

<bundles_post_ra>
// kernel: tpu_custom_call.1
= control target key start
LH: loop header
LB: loop body
LE: loop exit
PB: predicated region body
PF: predicated region fallthrough
CT: control target
= control target key end

     0   :  { %15 = vsyncpa [#allocation3], 0  ;;  %s3691_s0 = inlined_call_operand.hbm [shape: f32[8,6], index: 0, kind: input, shape index: {}]   ;;  %s3692_s1 = inlined_call_operand.vmem [shape: f32[8,4], index: 1, kind: input, shape index: {}]   ;;  %s3693_s2 = inlined_call_operand.hbm [shape: bf16[6,128], index: 2, kind: input, shape index: {}]   ;;  %s3694_s3 = inlined_call_operand.vmem [shape: bf16[36,128], index: 3, kind: input, shape index: {}]   ;;  %s3695_s4 = inlined_call_operand.hbm [shape: f32[1,128], index: 4, kind: input, shape index: {}]   ;;  %s3696_s5 = inlined_call_operand.vmem [shape: bf16[32,128], index: 5, kind: input, shape index: {}]   ;;  %s3697_s6 = inlined_call_operand.vmem [shape: bf16[32,128], index: 6, kind: input, shape index: {}]   ;;  %s3698_s7 = inlined_call_operand.vmem [shape: f32[1,128], index: 7, kind: input, shape index: {}]   ;;  %s3699_s8 = inlined_call_operand.vmem [shape: bf16[32,4], index: 8, kind: input, shape index: {}]   ;;  %s3700_s9 = inlined_call_operand.vmem [shape: f32[1,4], index: 9, kind: input, shape index: {}]   ;;  %s3701_s10 = inlined_call_operand.hbm [shape: f32[8,64], index: 10, kind: output, shape index: {}]  }
   0x1   :  { %16 = vsyncpa [#allocation6], 0 }
   0x2   :  { %17 = vsyncpa [#allocation4], 0  ;;  %s2973_s13 = smov [#allocation5]   ;;  %s2974_s15 = smov [#allocation2]  }
   0x3   :  { %s36_s14 = sshll.u32 %s2973_s13, 4  ;;  %s24_s16 = sshll.u32 %s2974_s15, 4  ;;  %s37_s14 = int_to_ptr.vmem [resolvable:$true] %s36_s14  ;;  %s25_s16 = int_to_ptr.vmem [resolvable:$true] %s24_s16 }
   0x4   :  { %s2879_s19 = scalar_lea.hbm %s3693_s2, 64 }
   0x5   :  { %p2880_p0 = scmp.ne.s32.totalorder %s3693_s2, %s2879_s19  ;;  %p2883_p1 = scmp.lt.u32.totalorder %s2879_s19, %s3693_s2 }
   0x7   :  { %p2885_p2 = pnand %p2883_p1, %p2880_p0 }
   0x9   :  { %2888 = shalt.err (!%p2885_p2)
}
   0xa   :  { %s2889_s24 = scalar_lea.vmem %s37_s14, 64  ;;  %p2894_p4 = scmp.lt.s32.totalorder %s37_s14, %s37_s14 }
   0xb   :  { %p2890_p3 = scmp.ne.s32.totalorder %s37_s14, %s2889_s24  ;;  %p2895_p5 = scmp.lt.s32.totalorder %s2889_s24, %s2889_s24 }
   0xd   :  { %p2896_p6 = por %p2895_p5, %p2894_p4 }
   0xf   :  { %p2897_p7 = pnand %p2896_p6, %p2890_p3 }
  0x11   :  { %2900 = shalt.err (!%p2897_p7)
}
  0x12   :  { %39 = dma.hbm_to_vmem [thread:$0]  %s3693_s2, 64, %s37_s14, [#allocation6]  }
  0x13   :  { %s2901_s29 = scalar_lea.hbm %s3691_s0, 128 }
  0x14   :  { %p2902_p8 = scmp.ne.s32.totalorder %s3691_s0, %s2901_s29  ;;  %p2905_p9 = scmp.lt.u32.totalorder %s2901_s29, %s3691_s0 }
  0x16   :  { %p2907_p10 = pnand %p2905_p9, %p2902_p8 }
  0x18   :  { %2910 = shalt.err (!%p2907_p10)
}
  0x19   :  { %s2911_s15 = scalar_lea.vmem %s25_s16, 128  ;;  %p2916_p12 = scmp.lt.s32.totalorder %s25_s16, %s25_s16 }
  0x1a   :  { %p2912_p11 = scmp.ne.s32.totalorder %s25_s16, %s2911_s15  ;;  %p2917_p13 = scmp.lt.s32.totalorder %s2911_s15, %s2911_s15 }
  0x1c   :  { %p2918_p0 = por %p2917_p13, %p2916_p12 }
  0x1e   :  { %p2919_p1 = pnand %p2918_p0, %p2912_p11 }
  0x20   :  { %2922 = shalt.err (!%p2919_p1)
}
  0x21   :  { %27 = dma.hbm_to_vmem [thread:$0]  %s3691_s0, 128, %s25_s16, [#allocation3]  }
  0x22   :  { %s2975_s17 = smov [#allocation7]   ;;  %s2923_s21 = scalar_lea.hbm %s3695_s4, 16 }
  0x23   :  { %s48_s18 = sshll.u32 %s2975_s17, 4  ;;  %p2924_p2 = scmp.ne.s32.totalorder %s3695_s4, %s2923_s21  ;;  %s49_s18 = int_to_ptr.vmem [resolvable:$true] %s48_s18 }
  0x24   :  { %p2927_p3 = scmp.lt.u32.totalorder %s2923_s21, %s3695_s4 }
  0x26   :  { %p2929_p4 = pnand %p2927_p3, %p2924_p2 }
  0x28   :  { %2932 = shalt.err (!%p2929_p4)
}
  0x29   :  { %s2933_s26 = scalar_lea.vmem %s49_s18, 16  ;;  %s2937_s0 = scalar_lea.vmem %s49_s18, 32 }
  0x2a   :  { %p2934_p5 = scmp.ne.s32.totalorder %s49_s18, %s2933_s26  ;;  %p2938_p6 = scmp.lt.s32.totalorder %s49_s18, %s49_s18 }
  0x2b   :  { %p2939_p7 = scmp.lt.s32.totalorder %s2937_s0, %s2933_s26 }
  0x2d   :  { %p2940_p8 = por %p2939_p7, %p2938_p6 }
  0x2f   :  { %p2941_p9 = pnand %p2940_p8, %p2934_p5 }
  0x31   :  { %2944 = shalt.err (!%p2941_p9)
}
  0x32   :  { %51 = dma.hbm_to_vmem [thread:$0]  %s3695_s4, 16, %s49_s18, [#allocation6]  }
  0x33   :  { %2967 = dma.done.wait [#allocation3], 128  }
  0x34   :  { %2968 = vsyncadd [#allocation3], 4294967168 }
  0x35   :  { %2969 = dma.done.wait [#allocation6], 80  }
  0x36   :  { %2970 = vsyncadd [#allocation6], 4294967216  ;;  %v2976_v0 = vmov 0.0   ;;  %vm2977_vm0 = vmmov 0   ;;  %vm86_vm1 = vcmask 1042432   ;;  %v3096_v1 = vld [vmem:[%s3692_s1] sm:$0xff] }
  0x37   :  { %2402 = vmatprep.subr.bf16.mxu1 %v2976_v0  ;;  %2396 = vmatprep.subr.bf16.mxu0 %v2976_v0  ;;  %s2978_s4 = smov 32   ;;  %v3103_v2 = vld [vmem:[%s3694_s3] sm:$0xff]   ;;  %v74_v3 = vld [vmem:[#allocation5] sm:$0x7]  ;;  %vm82_vm2 = vcmask 48128   ;;  %vm188_vm3 = vcmask 1041408  }
  0x38   :  { %2398 = vmatprep.mubr.msk.bf16.mxu0 %vm2977_vm0, %v2976_v0  ;;  %2408 = vmatprep.mubr.msk.bf16.mxu1 %vm2977_vm0, %v2976_v0  ;;  %v88_v4 = vsel %vm86_vm1, %v74_v3, 0  ;;  %v72_v5 = vld [vmem:[#allocation2] sm:$0xff]  ;;  %v3109_v6 = vld [vmem:[%s3694_s3 + $0x8] sm:$0xff]   ;;  %v2734_v8 = vld [vmem:[%s3694_s3 + $0x10] ss:$0 sps:$4 sm:$0x33]  }
  0x39   :  { %163 = vrot.lane.b32.xlu0 %v3096_v1, %s2978_s4  ;;  %2403 = vmatpush3.bf16.msra.mxu1 %v3103_v2  ;;  %v73_v7 = vpack.c.bf16 %v72_v5, %v72_v5  ;;  %v3120_v9 = vsel %vm188_vm3, %v2734_v8, 0  ;;  %vm166_vm4 = vcmask 261120   ;;  %vm184_vm5 = vcmask 293888   ;;  %v2230_v17 = vld [vmem:[#allocation7] ss:$0 sm:$0xff]  ;;  %s2979_s2 = smov 64  }
  0x3a   :  { %2397 = vmatpush3.bf16.msra.mxu0 %v88_v4  ;;  %2404 = vmatprep.subr.bf16.mxu1 %v2976_v0  ;;  %v3139_v34 = vld [vmem:[%s3697_s6] sm:$0xff]   ;;  %v3145_v35 = vld [vmem:[%s3697_s6 + $0x8] sm:$0xff]   ;;  %v2980_v38 = vmov 0   ;;  %s2982_s25 = smov 12   ;;  %s2983_s26 = smov 20   ;;  %vm2184_vm6 = vcmask 31744  }
  0x3b   :  { %2412 = vmatprep.subr.bf16.mxu0 %v2976_v0  ;;  %v3152_v36 = vld [vmem:[%s3696_s5] sm:$0xff]   ;;  %v3160_v39 = vld [vmem:[%s3696_s5 + $0x8] sm:$0xff]   ;;  %s2984_s0 = smov 36   ;;  %s2985_s16 = smov 44   ;;  %vm2186_vm7 = vcmask 64512   ;;  %vm2188_vm8 = vcmask 97280  }
  0x3c   :  { %v3184_v48 = vld [vmem:[%s3698_s7] ss:$0 sm:$0xff]  ;;  %v3201_v5 = vld [vmem:[%s3699_s8 + $0x8] sm:$0xff]   ;;  %s2987_s27 = smov 16   ;;  %s2988_s28 = smov 24   ;;  %vm2190_vm9 = vcmask 130048  }
  0x3d   :  { %2399 = vmatmul.mubr.msk.bf16.vlgmr.msra.gmra.mrb[0].mxu0 %vm82_vm2, %v73_v7  ;;  %2405 = vmatpush3.bf16.msra.mxu1 %v3109_v6  ;;  %v3195_v4 = vld [vmem:[%s3699_s8] sm:$0xff]   ;;  %s2989_s29 = smov 40   ;;  %s2990_s30 = smov 48   ;;  %vm2192_vm10 = vcmask 162816   ;;  %vm2194_vm11 = vcmask 195584   ;;  %vm2196_vm12 = vcmask 228352  }
  0x3e   :  { %2416 = vmatprep.mubr.msk.bf16.mxu0 %vm2977_vm0, %v2976_v0  ;;  %2406 = vmatprep.subr.bf16.mxu1 %v2976_v0  ;;  %s2991_s11 = smov 56   ;;  %s2993_s12 = smov 52   ;;  %vm2200_vm13 = vcmask 326656   ;;  %vm2202_vm14 = vcmask 359424   ;;  %vm2204_vm15 = vcmask 392192   ;;  %vm2208_vm1 = vcmask 457728  }
  0x3f   :  { %2413 = vmatpush3.bf16.msra.mxu0 %v3139_v34  ;;  %s2994_s13 = smov 60   ;;  %s2995_s1 = smov [#allocation8]   ;;  %vm2210_vm2 = vcmask 490496   ;;  %vm2212_vm3 = vcmask 523264  }
  0x40   :  { %2414 = vmatprep.subr.bf16.mxu0 %v2976_v0  ;;  %s2220_s15 = sshll.u32 %s2995_s1, 4  ;;  %s2221_s15 = int_to_ptr.vmem [resolvable:$true] %s2220_s15 }
  0x41   :  { %2407 = vmatpush3.bf16.msra.mxu1 %v3120_v9  ;;  %p2950_p11 = scmp.lt.s32.totalorder %s2221_s15, %s2221_s15 }
  0x42   :  { %2428 = vmatprep.subr.bf16.mxu1 %v2976_v0 }
  0x43   :  { %2415 = vmatpush3.bf16.msra.mxu0 %v3145_v35 }
  0x44   :  { %2420 = vmatprep.subr.bf16.mxu0 %v2976_v0 }
  0x46   :  { %2417 = vmatmul.mubr.bf16.vlgmr.msra.gmra.mrb[4].mxu0 %v2980_v38 }
  0x47   :  { %2421 = vmatpush3.bf16.msra.mxu0 %v3152_v36  ;;  %2424 = vmatprep.mubr.msk.bf16.mxu0 %vm2977_vm0, %v2976_v0 }
  0x48   :  { %2422 = vmatprep.subr.bf16.mxu0 %v2976_v0 }
  0x4b   :  { %2423 = vmatpush3.bf16.msra.mxu0 %v3160_v39 }
  0x4c   :  { %2436 = vmatprep.subr.bf16.mxu0 %v2976_v0 }
  0xab   :  { %v164_v10 = vpop.permute.xlu0 %163 }
  0xac   :  { %v167_v11 = vsel %vm166_vm4, 0.0, %v164_v10 }
  0xad   :  { %v168_v12 = vpack.c.bf16 %v167_v11, %v167_v11 }
  0xaf   :  { %2409 = vmatmul.mubr.msk.bf16.vlgmr.msra.gmra.mrb[0].mxu1 %vm184_vm5, %v168_v12 }
  0xb0   :  { %2432 = vmatprep.mubr.msk.bf16.mxu1 %vm2977_vm0, %v2976_v0  ;;  %2429 = vmatpush3.bf16.msra.mxu1 %v3195_v4 }
  0xb1   :  { %2430 = vmatprep.subr.bf16.mxu1 %v2976_v0 }
  0xb4   :  { %2431 = vmatpush3.bf16.msra.mxu1 %v3201_v5 }
  0xb5   :  { %2446 = vmatprep.subr.bf16.mxu1 %v2976_v0 }
 0x110   :  { %v124_v13 = vpop.f32.mrb[0].mxu0 }
 0x111   :  { %v2400_v14 = vpop.f32.mrb[1].mxu0  ;;  %v3128_v18 = vadd.f32 %v2230_v17, %v124_v13  ;;  %v3225_v13 = vld [vmem:[%s3700_s9] ss:$0 sm:$0xff] }
 0x112   :  { %v127_v15 = vpop.f32.mrb[2].mxu0 }
 0x113   :  { %v2401_v16 = vpop.f32.mrb[3].mxu0 }
 0x119   :  { %v307_v43 = vpop.f32.mrb[4].mxu0 }
 0x11a   :  { %v2418_v44 = vpop.f32.mrb[5].mxu0 }
 0x11b   :  { %v310_v45 = vpop.f32.mrb[6].mxu0 }
 0x11c   :  { %v2419_v46 = vpop.f32.mrb[7].mxu0 }
 0x182   :  { %v226_v19 = vpop.f32.mrb[0].mxu1 }
 0x183   :  { %v232_v20 = vadd.f32 %v226_v19, %v3128_v18  ;;  %v2410_v21 = vpop.f32.mrb[1].mxu1 }
 0x184   :  { %v229_v22 = vpop.f32.mrb[2].mxu1 }
 0x185   :  { %2741 = vtanh.f32 %v232_v20  ;;  %v2411_v23 = vpop.f32.mrb[3].mxu1  ;;  %v2238_v25 = vmul.f32 -1.442695, %v232_v20 }
 0x187   :  { %2743 = vpow2.f32 %v2238_v25 }
 0x18f   :  { %v2742_v24 = vpop.eup %2741 }
 0x190   :  { %242 = vrot.lane.b32.xlu0 %v2742_v24, %s2979_s2 }
 0x191   :  { %v2744_v26 = vpop.eup %2743 }
 0x192   :  { %v236_v27 = vadd.f32 1.0, %v2744_v26 }
 0x194   :  { %2745 = vrcp.f32 %v236_v27 }
 0x19e   :  { %v2746_v28 = vpop.eup %2745 }
 0x19f   :  { %v240_v31 = vmul.f32 0.0, %v2746_v28 }
 0x202   :  { %v243_v29 = vpop.permute.xlu0 %242 }
 0x203   :  { %v245_v30 = vmul.f32 %v2746_v28, %v243_v29 }
 0x205   :  { %247 = vrot.lane.b32.xlu1 %v245_v30, %s2978_s4 }
 0x277   :  { %v248_v32 = vpop.permute.xlu1 %247 }
 0x278   :  { %v3133_v33 = vadd.f32 %v248_v32, %v240_v31 }
 0x27a   :  { %2747 = vtanh.f32 %v3133_v33 }
 0x284   :  { %v2748_v37 = vpop.eup %2747 }
 0x285   :  { %253 = vrot.lane.b32.xlu1 %v2748_v37, %s2979_s2 }
 0x2f7   :  { %v254_v40 = vpop.permute.xlu1 %253 }
 0x2f8   :  { %v3167_v41 = vmul.f32 %v2746_v28, %v254_v40 }
 0x2fa   :  { %v257_v42 = vpack.c.bf16 %v3167_v41, %v3167_v41 }
 0x2fc   :  { %314 = vrot.lane.b32.xlu0 %v257_v42, %s2978_s4 }
 0x36e   :  { %v315_v47 = vpop.permute.xlu0 %314 }
 0x36f   :  { %2425 = vmatmul.mubr.msk.bf16.vlgmr.msra.gmra.mrb[8].mxu0 %vm166_vm4, %v315_v47 }
 0x370   :  { %2437 = vmatpush3.bf16.msra.mxu0 %v3103_v2  ;;  %2442 = vmatprep.mubr.msk.bf16.mxu0 %vm2977_vm0, %v2976_v0 }
 0x371   :  { %2438 = vmatprep.subr.bf16.mxu0 %v2976_v0 }
 0x374   :  { %2439 = vmatpush3.bf16.msra.mxu0 %v3109_v6 }
 0x375   :  { %2440 = vmatprep.subr.bf16.mxu0 %v2976_v0 }
 0x378   :  { %2441 = vmatpush3.bf16.msra.mxu0 %v3120_v9 }
 0x379   :  { %2462 = vmatprep.subr.bf16.mxu0 %v2976_v0 }
 0x442   :  { %v365_v49 = vpop.f32.mrb[8].mxu0 }
 0x443   :  { %v366_v50 = vadd.f32 %v365_v49, %v307_v43  ;;  %v2426_v51 = vpop.f32.mrb[9].mxu0 }
 0x444   :  { %v368_v52 = vpop.f32.mrb[10].mxu0 }
 0x445   :  { %v371_v53 = vadd.f32 %v3184_v48, %v366_v50  ;;  %v2427_v54 = vpop.f32.mrb[11].mxu0 }
 0x447   :  { %2749 = vtanh.f32 %v371_v53  ;;  %v2244_v56 = vmul.f32 -1.442695, %v371_v53 }
 0x449   :  { %2751 = vpow2.f32 %v2244_v56 }
 0x451   :  { %v2750_v55 = vpop.eup %2749 }
 0x452   :  { %381 = vrot.lane.b32.xlu1 %v2750_v55, %s2979_s2 }
 0x453   :  { %v2752_v57 = vpop.eup %2751 }
 0x454   :  { %v375_v58 = vadd.f32 1.0, %v2752_v57 }
 0x456   :  { %2753 = vrcp.f32 %v375_v58 }
 0x460   :  { %v2754_v59 = vpop.eup %2753 }
 0x461   :  { %v379_v62 = vmul.f32 0.0, %v2754_v59 }
 0x4c4   :  { %v382_v60 = vpop.permute.xlu1 %381 }
 0x4c5   :  { %v384_v61 = vmul.f32 %v2754_v59, %v382_v60 }
 0x4c7   :  { %386 = vrot.lane.b32.xlu0 %v384_v61, %s2978_s4 }
 0x539   :  { %v387_v63 = vpop.permute.xlu0 %386 }
 0x53a   :  { %v3189_v3 = vadd.f32 %v387_v63, %v379_v62 }
 0x53c   :  { %2755 = vtanh.f32 %v3189_v3 }
 0x546   :  { %v2756_v7 = vpop.eup %2755 }
 0x547   :  { %392 = vrot.lane.b32.xlu1 %v2756_v7, %s2979_s2 }
 0x5b9   :  { %v393_v8 = vpop.permute.xlu1 %392 }
 0x5ba   :  { %v395_v10 = vmul.f32 %v2754_v59, %v393_v8 }
 0x5bc   :  { %v396_v11 = vpack.c.bf16 %v395_v10, %v395_v10 }
 0x5be   :  { %398 = vrot.lane.b32.xlu0 %v396_v11, %s2978_s4 }
 0x630   :  { %v399_v12 = vpop.permute.xlu0 %398 }
 0x631   :  { %2433 = vmatmul.mubr.msk.bf16.vlgmr.msra.gmra.mrb[4].mxu1 %vm166_vm4, %v399_v12 }
 0x632   :  { %2447 = vmatpush3.bf16.msra.mxu1 %v3139_v34  ;;  %2450 = vmatprep.mubr.msk.bf16.mxu1 %vm2977_vm0, %v2976_v0 }
 0x633   :  { %2448 = vmatprep.subr.bf16.mxu1 %v2976_v0 }
 0x636   :  { %2449 = vmatpush3.bf16.msra.mxu1 %v3145_v35 }
 0x637   :  { %2454 = vmatprep.subr.bf16.mxu1 %v2976_v0 }
 0x639   :  { %2451 = vmatmul.mubr.msk.bf16.vlgmr.msra.gmra.mrb[8].mxu1 %vm166_vm4, %v399_v12 }
 0x63a   :  { %2455 = vmatpush3.bf16.msra.mxu1 %v3152_v36  ;;  %2458 = vmatprep.mubr.msk.bf16.mxu1 %vm2977_vm0, %v2976_v0 }
 0x63b   :  { %2456 = vmatprep.subr.bf16.mxu1 %v2976_v0 }
 0x63e   :  { %2457 = vmatpush3.bf16.msra.mxu1 %v3160_v39 }
 0x63f   :  { %2470 = vmatprep.subr.bf16.mxu1 %v2976_v0 }
 0x704   :  { %v449_v14 = vpop.f32.mrb[4].mxu1 }
 0x705   :  { %v3228_v15 = vadd.f32 %v3225_v13, %v449_v14  ;;  %v2434_v16 = vpop.f32.mrb[5].mxu1 }
 0x706   :  { %v452_v17 = vpop.f32.mrb[6].mxu1 }
 0x707   :  { %v455_v19 = vmul.f32 0.1, %v3228_v15  ;;  %v2435_v20 = vpop.f32.mrb[7].mxu1 }
 0x709   :  { %v3232_v21 = vadd.f32 %v455_v19, %v3096_v1 }
 0x70b   :  { %v2697_v22 = vpack.i.bf16 %v3232_v21, %v3167_v41 }
 0x70c   :  { %v570_v23 = vpop.f32.mrb[8].mxu1 }
 0x70d   :  { %2698 = vrot.lane.b32.xlu1 %v2697_v22, %s2978_s4  ;;  %v2452_v24 = vpop.f32.mrb[9].mxu1 }
 0x70e   :  { %v573_v25 = vpop.f32.mrb[10].mxu1 }
 0x70f   :  { %v2453_v26 = vpop.f32.mrb[11].mxu1 }
 0x77f   :  { %v2699_v27 = vpop.permute.xlu1 %2698 }
 0x780   :  { %v2701_v28 = vunpack.i.h.bf16 %v2699_v27  ;;  %v2700_v29 = vunpack.i.l.bf16 %v2699_v27 }
 0x782   :  { %v465_v30 = vsel %vm166_vm4, %v2700_v29, %v2701_v28 }
 0x783   :  { %v466_v31 = vpack.c.bf16 %v465_v30, %v465_v30 }
 0x785   :  { %2443 = vmatmul.mubr.msk.bf16.vlgmr.msra.gmra.mrb[12].mxu0 %vm184_vm5, %v466_v31 }
 0x786   :  { %2463 = vmatpush3.bf16.msra.mxu0 %v3195_v4  ;;  %2466 = vmatprep.mubr.msk.bf16.mxu0 %vm2977_vm0, %v2976_v0 }
 0x787   :  { %2464 = vmatprep.subr.bf16.mxu0 %v2976_v0 }
 0x78a   :  { %2465 = vmatpush3.bf16.msra.mxu0 %v3201_v5 }
 0x78b   :  { %2480 = vmatprep.subr.bf16.mxu0 %v2976_v0 }
 0x858   :  { %v504_v1 = vpop.f32.mrb[12].mxu0 }
 0x859   :  { %v510_v32 = vadd.f32 %v504_v1, %v3128_v18  ;;  %v2444_v37 = vpop.f32.mrb[13].mxu0 }
 0x85a   :  { %v507_v38 = vpop.f32.mrb[14].mxu0 }
 0x85b   :  { %2757 = vtanh.f32 %v510_v32  ;;  %v2445_v40 = vpop.f32.mrb[15].mxu0  ;;  %v2249_v42 = vmul.f32 -1.442695, %v510_v32 }
 0x85d   :  { %2759 = vpow2.f32 %v2249_v42 }
 0x865   :  { %v2758_v41 = vpop.eup %2757 }
 0x866   :  { %520 = vrot.lane.b32.xlu0 %v2758_v41, %s2979_s2 }
 0x867   :  { %v2760_v43 = vpop.eup %2759 }
 0x868   :  { %v514_v44 = vadd.f32 1.0, %v2760_v43 }
 0x86a   :  { %2761 = vrcp.f32 %v514_v44 }
 0x874   :  { %v2762_v45 = vpop.eup %2761 }
 0x875   :  { %v518_v49 = vmul.f32 %v2762_v45, %v3133_v33 }
 0x8d8   :  { %v521_v46 = vpop.permute.xlu0 %520 }
 0x8d9   :  { %v523_v47 = vmul.f32 %v2762_v45, %v521_v46 }
 0x8db   :  { %525 = vrot.lane.b32.xlu1 %v523_v47, %s2978_s4 }
 0x94d   :  { %v526_v50 = vpop.permute.xlu1 %525 }
 0x94e   :  { %v3249_v51 = vadd.f32 %v526_v50, %v518_v49 }
 0x950   :  { %2763 = vtanh.f32 %v3249_v51 }
 0x95a   :  { %v2764_v52 = vpop.eup %2763 }
 0x95b   :  { %531 = vrot.lane.b32.xlu0 %v2764_v52, %s2979_s2 }
 0x9cd   :  { %v532_v53 = vpop.permute.xlu0 %531 }
 0x9ce   :  { %v534_v54 = vmul.f32 %v2762_v45, %v532_v53 }
 0x9d0   :  { %v535_v55 = vpack.c.bf16 %v534_v54, %v534_v54 }
 0x9d2   :  { %577 = vrot.lane.b32.xlu1 %v535_v55, %s2978_s4 }
 0xa44   :  { %v578_v56 = vpop.permute.xlu1 %577 }
 0xa45   :  { %2459 = vmatmul.mubr.msk.bf16.vlgmr.msra.gmra.mrb[12].mxu1 %vm166_vm4, %v578_v56 }
 0xa46   :  { %2471 = vmatpush3.bf16.msra.mxu1 %v3103_v2  ;;  %2476 = vmatprep.mubr.msk.bf16.mxu1 %vm2977_vm0, %v2976_v0 }
 0xa47   :  { %2472 = vmatprep.subr.bf16.mxu1 %v2976_v0 }
 0xa4a   :  { %2473 = vmatpush3.bf16.msra.mxu1 %v3109_v6 }
 0xa4b   :  { %2474 = vmatprep.subr.bf16.mxu1 %v2976_v0 }
 0xa4e   :  { %2475 = vmatpush3.bf16.msra.mxu1 %v3120_v9 }
 0xa4f   :  { %2496 = vmatprep.subr.bf16.mxu1 %v2976_v0 }
 0xb18   :  { %v616_v33 = vpop.f32.mrb[12].mxu1 }
 0xb19   :  { %v617_v57 = vadd.f32 %v616_v33, %v570_v23  ;;  %v2460_v58 = vpop.f32.mrb[13].mxu1 }
 0xb1a   :  { %v619_v59 = vpop.f32.mrb[14].mxu1 }
 0xb1b   :  { %v622_v60 = vadd.f32 %v3184_v48, %v617_v57  ;;  %v2461_v61 = vpop.f32.mrb[15].mxu1 }
 0xb1d   :  { %2765 = vtanh.f32 %v622_v60  ;;  %v2252_v63 = vmul.f32 -1.442695, %v622_v60 }
 0xb1f   :  { %2767 = vpow2.f32 %v2252_v63 }
 0xb27   :  { %v2766_v62 = vpop.eup %2765 }
 0xb28   :  { %632 = vrot.lane.b32.xlu0 %v2766_v62, %s2979_s2 }
 0xb29   :  { %v2768_v7 = vpop.eup %2767 }
 0xb2a   :  { %v626_v8 = vadd.f32 1.0, %v2768_v7 }
 0xb2c   :  { %2769 = vrcp.f32 %v626_v8 }
 0xb36   :  { %v2770_v10 = vpop.eup %2769 }
 0xb37   :  { %v630_v14 = vmul.f32 %v2770_v10, %v3189_v3 }
 0xb9a   :  { %v633_v11 = vpop.permute.xlu0 %632 }
 0xb9b   :  { %v635_v12 = vmul.f32 %v2770_v10, %v633_v11 }
 0xb9d   :  { %637 = vrot.lane.b32.xlu1 %v635_v12, %s2978_s4 }
 0xc0f   :  { %v638_v16 = vpop.permute.xlu1 %637 }
 0xc10   :  { %v3267_v17 = vadd.f32 %v638_v16, %v630_v14 }
 0xc12   :  { %2771 = vtanh.f32 %v3267_v17 }
 0xc1c   :  { %v2772_v19 = vpop.eup %2771 }
 0xc1d   :  { %643 = vrot.lane.b32.xlu0 %v2772_v19, %s2979_s2 }
 0xc8f   :  { %v644_v20 = vpop.permute.xlu0 %643 }
 0xc90   :  { %v646_v22 = vmul.f32 %v2770_v10, %v644_v20 }
 0xc92   :  { %v647_v23 = vpack.c.bf16 %v646_v22, %v646_v22 }
 0xc94   :  { %649 = vrot.lane.b32.xlu1 %v647_v23, %s2978_s4 }
 0xd06   :  { %v650_v24 = vpop.permute.xlu1 %649 }
 0xd07   :  { %2467 = vmatmul.mubr.msk.bf16.vlgmr.msra.gmra.mrb[16].mxu0 %vm166_vm4, %v650_v24 }
 0xd08   :  { %2481 = vmatpush3.bf16.msra.mxu0 %v3139_v34  ;;  %2484 = vmatprep.mubr.msk.bf16.mxu0 %vm2977_vm0, %v2976_v0 }
 0xd09   :  { %2482 = vmatprep.subr.bf16.mxu0 %v2976_v0 }
 0xd0c   :  { %2483 = vmatpush3.bf16.msra.mxu0 %v3145_v35 }
 0xd0d   :  { %2488 = vmatprep.subr.bf16.mxu0 %v2976_v0 }
 0xd0f   :  { %2485 = vmatmul.mubr.msk.bf16.vlgmr.msra.gmra.mrb[20].mxu0 %vm166_vm4, %v650_v24 }
 0xd10   :  { %2489 = vmatpush3.bf16.msra.mxu0 %v3152_v36  ;;  %2492 = vmatprep.mubr.msk.bf16.mxu0 %vm2977_vm0, %v2976_v0 }
 0xd11   :  { %2490 = vmatprep.subr.bf16.mxu0 %v2976_v0 }
 0xd14   :  { %2491 = vmatpush3.bf16.msra.mxu0 %v3160_v39 }
 0xd15   :  { %2504 = vmatprep.subr.bf16.mxu0 %v2976_v0 }
 0xdda   :  { %v688_v3 = vpop.f32.mrb[16].mxu0 }
 0xddb   :  { %v3287_v25 = vadd.f32 %v3225_v13, %v688_v3  ;;  %v2468_v26 = vpop.f32.mrb[17].mxu0 }
 0xddc   :  { %v691_v27 = vpop.f32.mrb[18].mxu0 }
 0xddd   :  { %v694_v28 = vmul.f32 0.1, %v3287_v25  ;;  %v2469_v29 = vpop.f32.mrb[19].mxu0 }
 0xddf   :  { %v3291_v30 = vadd.f32 %v694_v28, %v3232_v21 }
 0xde1   :  { %v2702_v31 = vpack.i.bf16 %v3291_v30, %v534_v54 }
 0xde2   :  { %v809_v1 = vpop.f32.mrb[20].mxu0 }
 0xde3   :  { %2703 = vrot.lane.b32.xlu0 %v2702_v31, %s2978_s4  ;;  %v2486_v32 = vpop.f32.mrb[21].mxu0 }
 0xde4   :  { %v812_v37 = vpop.f32.mrb[22].mxu0 }
 0xde5   :  { %v2487_v38 = vpop.f32.mrb[23].mxu0 }
 0xe55   :  { %v2704_v40 = vpop.permute.xlu0 %2703 }
 0xe56   :  { %v2706_v41 = vunpack.i.h.bf16 %v2704_v40  ;;  %v2705_v42 = vunpack.i.l.bf16 %v2704_v40 }
 0xe58   :  { %v704_v43 = vsel %vm166_vm4, %v2705_v42, %v2706_v41 }
 0xe59   :  { %v705_v44 = vpack.c.bf16 %v704_v43, %v704_v43 }
 0xe5b   :  { %2477 = vmatmul.mubr.msk.bf16.vlgmr.msra.gmra.mrb[16].mxu1 %vm184_vm5, %v705_v44 }
 0xe5c   :  { %2497 = vmatpush3.bf16.msra.mxu1 %v3195_v4  ;;  %2500 = vmatprep.mubr.msk.bf16.mxu1 %vm2977_vm0, %v2976_v0 }
 0xe5d   :  { %2498 = vmatprep.subr.bf16.mxu1 %v2976_v0 }
 0xe60   :  { %2499 = vmatpush3.bf16.msra.mxu1 %v3201_v5 }
 0xe61   :  { %2514 = vmatprep.subr.bf16.mxu1 %v2976_v0 }
 0xf2e   :  { %v743_v45 = vpop.f32.mrb[16].mxu1 }
 0xf2f   :  { %v749_v46 = vadd.f32 %v743_v45, %v3128_v18  ;;  %v2478_v47 = vpop.f32.mrb[17].mxu1 }
 0xf30   :  { %v746_v49 = vpop.f32.mrb[18].mxu1 }
 0xf31   :  { %2773 = vtanh.f32 %v749_v46  ;;  %v2479_v50 = vpop.f32.mrb[19].mxu1  ;;  %v2255_v53 = vmul.f32 -1.442695, %v749_v46 }
 0xf33   :  { %2775 = vpow2.f32 %v2255_v53 }
 0xf3b   :  { %v2774_v52 = vpop.eup %2773 }
 0xf3c   :  { %759 = vrot.lane.b32.xlu1 %v2774_v52, %s2979_s2 }
 0xf3d   :  { %v2776_v54 = vpop.eup %2775 }
 0xf3e   :  { %v753_v55 = vadd.f32 1.0, %v2776_v54 }
 0xf40   :  { %2777 = vrcp.f32 %v753_v55 }
 0xf4a   :  { %v2778_v56 = vpop.eup %2777 }
 0xf4b   :  { %v757_v58 = vmul.f32 %v2778_v56, %v3249_v51 }
 0xfae   :  { %v760_v33 = vpop.permute.xlu1 %759 }
 0xfaf   :  { %v762_v57 = vmul.f32 %v2778_v56, %v760_v33 }
 0xfb1   :  { %764 = vrot.lane.b32.xlu0 %v762_v57, %s2978_s4 }
0x1023   :  { %v765_v59 = vpop.permute.xlu0 %764 }
0x1024   :  { %v3307_v60 = vadd.f32 %v765_v59, %v757_v58 }
0x1026   :  { %2779 = vtanh.f32 %v3307_v60 }
0x1030   :  { %v2780_v61 = vpop.eup %2779 }
0x1031   :  { %770 = vrot.lane.b32.xlu1 %v2780_v61, %s2979_s2 }
0x10a3   :  { %v771_v62 = vpop.permute.xlu1 %770 }
0x10a4   :  { %v773_v63 = vmul.f32 %v2778_v56, %v771_v62 }
0x10a6   :  { %v774_v7 = vpack.c.bf16 %v773_v63, %v773_v63 }
0x10a8   :  { %816 = vrot.lane.b32.xlu0 %v774_v7, %s2978_s4 }
0x111a   :  { %v817_v8 = vpop.permute.xlu0 %816 }
0x111b   :  { %2493 = vmatmul.mubr.msk.bf16.vlgmr.msra.gmra.mrb[24].mxu0 %vm166_vm4, %v817_v8 }
0x111c   :  { %2505 = vmatpush3.bf16.msra.mxu0 %v3103_v2  ;;  %2510 = vmatprep.mubr.msk.bf16.mxu0 %vm2977_vm0, %v2976_v0 }
0x111d   :  { %2506 = vmatprep.subr.bf16.mxu0 %v2976_v0 }
0x1120   :  { %2507 = vmatpush3.bf16.msra.mxu0 %v3109_v6 }
0x1121   :  { %2508 = vmatprep.subr.bf16.mxu0 %v2976_v0 }
0x1124   :  { %2509 = vmatpush3.bf16.msra.mxu0 %v3120_v9 }
0x1125   :  { %2530 = vmatprep.subr.bf16.mxu0 %v2976_v0 }
0x11ee   :  { %v855_v51 = vpop.f32.mrb[24].mxu0 }
0x11ef   :  { %v856_v10 = vadd.f32 %v855_v51, %v809_v1  ;;  %v2494_v11 = vpop.f32.mrb[25].mxu0 }
0x11f0   :  { %v858_v12 = vpop.f32.mrb[26].mxu0 }
0x11f1   :  { %v861_v14 = vadd.f32 %v3184_v48, %v856_v10  ;;  %v2495_v16 = vpop.f32.mrb[27].mxu0 }
0x11f3   :  { %2781 = vtanh.f32 %v861_v14  ;;  %v2258_v20 = vmul.f32 -1.442695, %v861_v14 }
0x11f5   :  { %2783 = vpow2.f32 %v2258_v20 }
0x11fd   :  { %v2782_v19 = vpop.eup %2781 }
0x11fe   :  { %871 = vrot.lane.b32.xlu1 %v2782_v19, %s2979_s2 }
0x11ff   :  { %v2784_v22 = vpop.eup %2783 }
0x1200   :  { %v865_v23 = vadd.f32 1.0, %v2784_v22 }
0x1202   :  { %2785 = vrcp.f32 %v865_v23 }
0x120c   :  { %v2786_v24 = vpop.eup %2785 }
0x120d   :  { %v869_v27 = vmul.f32 %v2786_v24, %v3267_v17 }
0x1270   :  { %v872_v3 = vpop.permute.xlu1 %871 }
0x1271   :  { %v874_v26 = vmul.f32 %v2786_v24, %v872_v3 }
0x1273   :  { %876 = vrot.lane.b32.xlu0 %v874_v26, %s2978_s4 }
0x12e5   :  { %v877_v28 = vpop.permute.xlu0 %876 }
0x12e6   :  { %v3325_v29 = vadd.f32 %v877_v28, %v869_v27 }
0x12e8   :  { %2787 = vtanh.f32 %v3325_v29 }
0x12f2   :  { %v2788_v31 = vpop.eup %2787 }
0x12f3   :  { %882 = vrot.lane.b32.xlu1 %v2788_v31, %s2979_s2 }
0x1365   :  { %v883_v1 = vpop.permute.xlu1 %882 }
0x1366   :  { %v885_v32 = vmul.f32 %v2786_v24, %v883_v1 }
0x1368   :  { %v886_v37 = vpack.c.bf16 %v885_v32, %v885_v32 }
0x136a   :  { %888 = vrot.lane.b32.xlu0 %v886_v37, %s2978_s4 }
0x13dc   :  { %v889_v38 = vpop.permute.xlu0 %888 }
0x13dd   :  { %2501 = vmatmul.mubr.msk.bf16.vlgmr.msra.gmra.mrb[20].mxu1 %vm166_vm4, %v889_v38 }
0x13de   :  { %2515 = vmatpush3.bf16.msra.mxu1 %v3139_v34  ;;  %2518 = vmatprep.mubr.msk.bf16.mxu1 %vm2977_vm0, %v2976_v0 }
0x13df   :  { %2516 = vmatprep.subr.bf16.mxu1 %v2976_v0 }
0x13e2   :  { %2517 = vmatpush3.bf16.msra.mxu1 %v3145_v35 }
0x13e3   :  { %2522 = vmatprep.subr.bf16.mxu1 %v2976_v0 }
0x13e5   :  { %2519 = vmatmul.mubr.msk.bf16.vlgmr.msra.gmra.mrb[24].mxu1 %vm166_vm4, %v889_v38 }
0x13e6   :  { %2523 = vmatpush3.bf16.msra.mxu1 %v3152_v36  ;;  %2526 = vmatprep.mubr.msk.bf16.mxu1 %vm2977_vm0, %v2976_v0 }
0x13e7   :  { %2524 = vmatprep.subr.bf16.mxu1 %v2976_v0 }
0x13ea   :  { %2525 = vmatpush3.bf16.msra.mxu1 %v3160_v39 }
0x13eb   :  { %2538 = vmatprep.subr.bf16.mxu1 %v2976_v0 }
0x14b0   :  { %v927_v17 = vpop.f32.mrb[20].mxu1 }
0x14b1   :  { %v3345_v40 = vadd.f32 %v3225_v13, %v927_v17  ;;  %v2502_v41 = vpop.f32.mrb[21].mxu1 }
0x14b2   :  { %v930_v42 = vpop.f32.mrb[22].mxu1 }
0x14b3   :  { %v933_v43 = vmul.f32 0.1, %v3345_v40  ;;  %v2503_v44 = vpop.f32.mrb[23].mxu1 }
0x14b5   :  { %v3349_v45 = vadd.f32 %v933_v43, %v3291_v30 }
0x14b7   :  { %v2707_v46 = vpack.i.bf16 %v3349_v45, %v773_v63 }
0x14b8   :  { %v1048_v47 = vpop.f32.mrb[24].mxu1 }
0x14b9   :  { %2708 = vrot.lane.b32.xlu1 %v2707_v46, %s2978_s4  ;;  %v2520_v49 = vpop.f32.mrb[25].mxu1 }
0x14ba   :  { %v1051_v50 = vpop.f32.mrb[26].mxu1 }
0x14bb   :  { %v2521_v52 = vpop.f32.mrb[27].mxu1 }
0x152b   :  { %v2709_v53 = vpop.permute.xlu1 %2708 }
0x152c   :  { %v2711_v54 = vunpack.i.h.bf16 %v2709_v53  ;;  %v2710_v55 = vunpack.i.l.bf16 %v2709_v53 }
0x152e   :  { %v943_v56 = vsel %vm166_vm4, %v2710_v55, %v2711_v54 }
0x152f   :  { %v944_v33 = vpack.c.bf16 %v943_v56, %v943_v56 }
0x1531   :  { %2511 = vmatmul.mubr.msk.bf16.vlgmr.msra.gmra.mrb[28].mxu0 %vm184_vm5, %v944_v33 }
0x1532   :  { %2531 = vmatpush3.bf16.msra.mxu0 %v3195_v4  ;;  %2534 = vmatprep.mubr.msk.bf16.mxu0 %vm2977_vm0, %v2976_v0 }
0x1533   :  { %2532 = vmatprep.subr.bf16.mxu0 %v2976_v0 }
0x1536   :  { %2533 = vmatpush3.bf16.msra.mxu0 %v3201_v5 }
0x1537   :  { %2548 = vmatprep.subr.bf16.mxu0 %v2976_v0 }
0x1604   :  { %v982_v57 = vpop.f32.mrb[28].mxu0 }
0x1605   :  { %v988_v58 = vadd.f32 %v982_v57, %v3128_v18  ;;  %v2512_v59 = vpop.f32.mrb[29].mxu0 }
0x1606   :  { %v985_v61 = vpop.f32.mrb[30].mxu0 }
0x1607   :  { %2789 = vtanh.f32 %v988_v58  ;;  %v2513_v62 = vpop.f32.mrb[31].mxu0  ;;  %v2261_v7 = vmul.f32 -1.442695, %v988_v58 }
0x1609   :  { %2791 = vpow2.f32 %v2261_v7 }
0x1611   :  { %v2790_v63 = vpop.eup %2789 }
0x1612   :  { %998 = vrot.lane.b32.xlu0 %v2790_v63, %s2979_s2 }
0x1613   :  { %v2792_v8 = vpop.eup %2791 }
0x1614   :  { %v992_v51 = vadd.f32 1.0, %v2792_v8 }
0x1616   :  { %2793 = vrcp.f32 %v992_v51 }
0x1620   :  { %v2794_v10 = vpop.eup %2793 }
0x1621   :  { %v996_v14 = vmul.f32 %v2794_v10, %v3307_v60 }
0x1684   :  { %v999_v11 = vpop.permute.xlu0 %998 }
0x1685   :  { %v1001_v12 = vmul.f32 %v2794_v10, %v999_v11 }
0x1687   :  { %1003 = vrot.lane.b32.xlu1 %v1001_v12, %s2978_s4 }
0x16f9   :  { %v1004_v16 = vpop.permute.xlu1 %1003 }
0x16fa   :  { %v3365_v19 = vadd.f32 %v1004_v16, %v996_v14 }
0x16fc   :  { %2795 = vtanh.f32 %v3365_v19 }
0x1706   :  { %v2796_v20 = vpop.eup %2795 }
0x1707   :  { %1009 = vrot.lane.b32.xlu0 %v2796_v20, %s2979_s2 }
0x1779   :  { %v1010_v22 = vpop.permute.xlu0 %1009 }
0x177a   :  { %v1012_v23 = vmul.f32 %v2794_v10, %v1010_v22 }
0x177c   :  { %v1013_v24 = vpack.c.bf16 %v1012_v23, %v1012_v23 }
0x177e   :  { %1055 = vrot.lane.b32.xlu1 %v1013_v24, %s2978_s4 }
0x17f0   :  { %v1056_v3 = vpop.permute.xlu1 %1055 }
0x17f1   :  { %2527 = vmatmul.mubr.msk.bf16.vlgmr.msra.gmra.mrb[28].mxu1 %vm166_vm4, %v1056_v3 }
0x17f2   :  { %2539 = vmatpush3.bf16.msra.mxu1 %v3103_v2  ;;  %2544 = vmatprep.mubr.msk.bf16.mxu1 %vm2977_vm0, %v2976_v0 }
0x17f3   :  { %2540 = vmatprep.subr.bf16.mxu1 %v2976_v0 }
0x17f6   :  { %2541 = vmatpush3.bf16.msra.mxu1 %v3109_v6 }
0x17f7   :  { %2542 = vmatprep.subr.bf16.mxu1 %v2976_v0 }
0x17fa   :  { %2543 = vmatpush3.bf16.msra.mxu1 %v3120_v9 }
0x17fb   :  { %2564 = vmatprep.subr.bf16.mxu1 %v2976_v0 }
0x18c4   :  { %v1094_v60 = vpop.f32.mrb[28].mxu1 }
0x18c5   :  { %v1095_v26 = vadd.f32 %v1094_v60, %v1048_v47  ;;  %v2528_v27 = vpop.f32.mrb[29].mxu1 }
0x18c6   :  { %v1097_v28 = vpop.f32.mrb[30].mxu1 }
0x18c7   :  { %v1100_v31 = vadd.f32 %v3184_v48, %v1095_v26  ;;  %v2529_v1 = vpop.f32.mrb[31].mxu1 }
0x18c9   :  { %2797 = vtanh.f32 %v1100_v31  ;;  %v2264_v37 = vmul.f32 -1.442695, %v1100_v31 }
0x18cb   :  { %2799 = vpow2.f32 %v2264_v37 }
0x18d3   :  { %v2798_v32 = vpop.eup %2797 }
0x18d4   :  { %1110 = vrot.lane.b32.xlu0 %v2798_v32, %s2979_s2 }
0x18d5   :  { %v2800_v38 = vpop.eup %2799 }
0x18d6   :  { %v1104_v17 = vadd.f32 1.0, %v2800_v38 }
0x18d8   :  { %2801 = vrcp.f32 %v1104_v17 }
0x18e2   :  { %v2802_v41 = vpop.eup %2801 }
0x18e3   :  { %v1108_v44 = vmul.f32 %v2802_v41, %v3325_v29 }
0x1946   :  { %v1111_v42 = vpop.permute.xlu0 %1110 }
0x1947   :  { %v1113_v43 = vmul.f32 %v2802_v41, %v1111_v42 }
0x1949   :  { %1115 = vrot.lane.b32.xlu1 %v1113_v43, %s2978_s4 }
0x19bb   :  { %v1116_v46 = vpop.permute.xlu1 %1115 }
0x19bc   :  { %v3383_v47 = vadd.f32 %v1116_v46, %v1108_v44 }
0x19be   :  { %2803 = vtanh.f32 %v3383_v47 }
0x19c8   :  { %v2804_v49 = vpop.eup %2803 }
0x19c9   :  { %1121 = vrot.lane.b32.xlu0 %v2804_v49, %s2979_s2 }
0x1a3b   :  { %v1122_v50 = vpop.permute.xlu0 %1121 }
0x1a3c   :  { %v1124_v52 = vmul.f32 %v2802_v41, %v1122_v50 }
0x1a3e   :  { %v1125_v53 = vpack.c.bf16 %v1124_v52, %v1124_v52 }
0x1a40   :  { %1127 = vrot.lane.b32.xlu1 %v1125_v53, %s2978_s4 }
0x1ab2   :  { %v1128_v54 = vpop.permute.xlu1 %1127 }
0x1ab3   :  { %2535 = vmatmul.mubr.msk.bf16.vlgmr.msra.gmra.mrb[32].mxu0 %vm166_vm4, %v1128_v54 }
0x1ab4   :  { %2549 = vmatpush3.bf16.msra.mxu0 %v3139_v34  ;;  %2552 = vmatprep.mubr.msk.bf16.mxu0 %vm2977_vm0, %v2976_v0 }
0x1ab5   :  { %2550 = vmatprep.subr.bf16.mxu0 %v2976_v0 }
0x1ab8   :  { %2551 = vmatpush3.bf16.msra.mxu0 %v3145_v35 }
0x1ab9   :  { %2556 = vmatprep.subr.bf16.mxu0 %v2976_v0 }
0x1abb   :  { %2553 = vmatmul.mubr.msk.bf16.vlgmr.msra.gmra.mrb[36].mxu0 %vm166_vm4, %v1128_v54 }
0x1abc   :  { %2557 = vmatpush3.bf16.msra.mxu0 %v3152_v36  ;;  %2560 = vmatprep.mubr.msk.bf16.mxu0 %vm2977_vm0, %v2976_v0 }
0x1abd   :  { %2558 = vmatprep.subr.bf16.mxu0 %v2976_v0 }
0x1ac0   :  { %2559 = vmatpush3.bf16.msra.mxu0 %v3160_v39 }
0x1ac1   :  { %2572 = vmatprep.subr.bf16.mxu0 %v2976_v0 }
0x1b86   :  { %v1166_v29 = vpop.f32.mrb[32].mxu0 }
0x1b87   :  { %v3403_v55 = vadd.f32 %v3225_v13, %v1166_v29  ;;  %v2536_v56 = vpop.f32.mrb[33].mxu0 }
0x1b88   :  { %v1169_v33 = vpop.f32.mrb[34].mxu0 }
0x1b89   :  { %v1172_v57 = vmul.f32 0.1, %v3403_v55  ;;  %v2537_v58 = vpop.f32.mrb[35].mxu0 }
0x1b8b   :  { %v3407_v59 = vadd.f32 %v1172_v57, %v3349_v45 }
0x1b8d   :  { %v2712_v61 = vpack.i.bf16 %v3407_v59, %v1012_v23 }
0x1b8e   :  { %v1287_v62 = vpop.f32.mrb[36].mxu0 }
0x1b8f   :  { %2713 = vrot.lane.b32.xlu0 %v2712_v61, %s2978_s4  ;;  %v2554_v63 = vpop.f32.mrb[37].mxu0 }
0x1b90   :  { %v1290_v7 = vpop.f32.mrb[38].mxu0 }
0x1b91   :  { %v2555_v8 = vpop.f32.mrb[39].mxu0 }
0x1c01   :  { %v2714_v51 = vpop.permute.xlu0 %2713 }
0x1c02   :  { %v2716_v10 = vunpack.i.h.bf16 %v2714_v51  ;;  %v2715_v11 = vunpack.i.l.bf16 %v2714_v51 }
0x1c04   :  { %v1182_v12 = vsel %vm166_vm4, %v2715_v11, %v2716_v10 }
0x1c05   :  { %v1183_v14 = vpack.c.bf16 %v1182_v12, %v1182_v12 }
0x1c07   :  { %2545 = vmatmul.mubr.msk.bf16.vlgmr.msra.gmra.mrb[32].mxu1 %vm184_vm5, %v1183_v14 }
0x1c08   :  { %2565 = vmatpush3.bf16.msra.mxu1 %v3195_v4  ;;  %2568 = vmatprep.mubr.msk.bf16.mxu1 %vm2977_vm0, %v2976_v0 }
0x1c09   :  { %2566 = vmatprep.subr.bf16.mxu1 %v2976_v0 }
0x1c0c   :  { %2567 = vmatpush3.bf16.msra.mxu1 %v3201_v5 }
0x1c0d   :  { %2582 = vmatprep.subr.bf16.mxu1 %v2976_v0 }
0x1cda   :  { %v1221_v16 = vpop.f32.mrb[32].mxu1 }
0x1cdb   :  { %v1227_v20 = vadd.f32 %v1221_v16, %v3128_v18  ;;  %v2546_v22 = vpop.f32.mrb[33].mxu1 }
0x1cdc   :  { %v1224_v23 = vpop.f32.mrb[34].mxu1 }
0x1cdd   :  { %2805 = vtanh.f32 %v1227_v20  ;;  %v2547_v24 = vpop.f32.mrb[35].mxu1  ;;  %v2267_v60 = vmul.f32 -1.442695, %v1227_v20 }
0x1cdf   :  { %2807 = vpow2.f32 %v2267_v60 }
0x1ce7   :  { %v2806_v3 = vpop.eup %2805 }
0x1ce8   :  { %1237 = vrot.lane.b32.xlu1 %v2806_v3, %s2979_s2 }
0x1ce9   :  { %v2808_v26 = vpop.eup %2807 }
0x1cea   :  { %v1231_v27 = vadd.f32 1.0, %v2808_v26 }
0x1cec   :  { %2809 = vrcp.f32 %v1231_v27 }
0x1cf6   :  { %v2810_v28 = vpop.eup %2809 }
0x1cf7   :  { %v1235_v32 = vmul.f32 %v2810_v28, %v3365_v19 }
0x1d5a   :  { %v1238_v31 = vpop.permute.xlu1 %1237 }
0x1d5b   :  { %v1240_v1 = vmul.f32 %v2810_v28, %v1238_v31 }
0x1d5d   :  { %1242 = vrot.lane.b32.xlu0 %v1240_v1, %s2978_s4 }
0x1dcf   :  { %v1243_v37 = vpop.permute.xlu0 %1242 }
0x1dd0   :  { %v3423_v38 = vadd.f32 %v1243_v37, %v1235_v32 }
0x1dd2   :  { %2811 = vtanh.f32 %v3423_v38 }
0x1ddc   :  { %v2812_v17 = vpop.eup %2811 }
0x1ddd   :  { %1248 = vrot.lane.b32.xlu1 %v2812_v17, %s2979_s2 }
0x1e4f   :  { %v1249_v41 = vpop.permute.xlu1 %1248 }
0x1e50   :  { %v1251_v42 = vmul.f32 %v2810_v28, %v1249_v41 }
0x1e52   :  { %v1252_v43 = vpack.c.bf16 %v1251_v42, %v1251_v42 }
0x1e54   :  { %1294 = vrot.lane.b32.xlu0 %v1252_v43, %s2978_s4 }
0x1ec6   :  { %v1295_v44 = vpop.permute.xlu0 %1294 }
0x1ec7   :  { %2561 = vmatmul.mubr.msk.bf16.vlgmr.msra.gmra.mrb[40].mxu0 %vm166_vm4, %v1295_v44 }
0x1ec8   :  { %2573 = vmatpush3.bf16.msra.mxu0 %v3103_v2  ;;  %2578 = vmatprep.mubr.msk.bf16.mxu0 %vm2977_vm0, %v2976_v0 }
0x1ec9   :  { %2574 = vmatprep.subr.bf16.mxu0 %v2976_v0 }
0x1ecc   :  { %2575 = vmatpush3.bf16.msra.mxu0 %v3109_v6 }
0x1ecd   :  { %2576 = vmatprep.subr.bf16.mxu0 %v2976_v0 }
0x1ed0   :  { %2577 = vmatpush3.bf16.msra.mxu0 %v3120_v9 }
0x1ed1   :  { %2598 = vmatprep.subr.bf16.mxu0 %v2976_v0 }
0x1f9a   :  { %v1333_v19 = vpop.f32.mrb[40].mxu0 }
0x1f9b   :  { %v1334_v46 = vadd.f32 %v1333_v19, %v1287_v62  ;;  %v2562_v49 = vpop.f32.mrb[41].mxu0 }
0x1f9c   :  { %v1336_v50 = vpop.f32.mrb[42].mxu0 }
0x1f9d   :  { %v1339_v52 = vadd.f32 %v3184_v48, %v1334_v46  ;;  %v2563_v2 = vpop.f32.mrb[43].mxu0 }
0x1f9f   :  { %2813 = vtanh.f32 %v1339_v52  ;;  %v2270_v54 = vmul.f32 -1.442695, %v1339_v52 }
0x1fa1   :  { %2815 = vpow2.f32 %v2270_v54  ;;  %v3503_v54 = vld [vmem:[%s3694_s3 + $0x8] sm:$0xff]  }
0x1fa9   :  { %v2814_v53 = vpop.eup %2813 }
0x1faa   :  { %1349 = vrot.lane.b32.xlu1 %v2814_v53, %s2979_s2 }
0x1fab   :  { %v2816_v6 = vpop.eup %2815 }
0x1fac   :  { %v1343_v29 = vadd.f32 1.0, %v2816_v6 }
0x1fae   :  { %2817 = vrcp.f32 %v1343_v29 }
0x1fb8   :  { %v2818_v56 = vpop.eup %2817 }
0x1fb9   :  { %v1347_v58 = vmul.f32 %v2818_v56, %v3383_v47 }
0x201c   :  { %v1350_v33 = vpop.permute.xlu1 %1349 }
0x201d   :  { %v1352_v57 = vmul.f32 %v2818_v56, %v1350_v33 }
0x201f   :  { %1354 = vrot.lane.b32.xlu0 %v1352_v57, %s2978_s4  ;;  %v3512_v57 = vld [vmem:[%s3698_s7] ss:$0 sm:$0xff] }
0x2091   :  { %v1355_v61 = vpop.permute.xlu0 %1354 }
0x2092   :  { %v3441_v62 = vadd.f32 %v1355_v61, %v1347_v58 }
0x2094   :  { %2819 = vtanh.f32 %v3441_v62 }
0x209e   :  { %v2820_v48 = vpop.eup %2819 }
0x209f   :  { %1360 = vrot.lane.b32.xlu1 %v2820_v48, %s2979_s2 }
0x2111   :  { %v1361_v63 = vpop.permute.xlu1 %1360 }
0x2112   :  { %v1363_v7 = vmul.f32 %v2818_v56, %v1361_v63 }
0x2114   :  { %v1364_v8 = vpack.c.bf16 %v1363_v7, %v1363_v7 }
0x2116   :  { %1366 = vrot.lane.b32.xlu0 %v1364_v8, %s2978_s4 }
0x2188   :  { %v1367_v51 = vpop.permute.xlu0 %1366 }
0x2189   :  { %2569 = vmatmul.mubr.msk.bf16.vlgmr.msra.gmra.mrb[36].mxu1 %vm166_vm4, %v1367_v51 }
0x218a   :  { %2583 = vmatpush3.bf16.msra.mxu1 %v3139_v34  ;;  %2586 = vmatprep.mubr.msk.bf16.mxu1 %vm2977_vm0, %v2976_v0 }
0x218b   :  { %2584 = vmatprep.subr.bf16.mxu1 %v2976_v0 }
0x218e   :  { %2585 = vmatpush3.bf16.msra.mxu1 %v3145_v35 }
0x218f   :  { %2590 = vmatprep.subr.bf16.mxu1 %v2976_v0 }
0x2191   :  { %2587 = vmatmul.mubr.msk.bf16.vlgmr.msra.gmra.mrb[40].mxu1 %vm166_vm4, %v1367_v51 }
0x2192   :  { %2591 = vmatpush3.bf16.msra.mxu1 %v3152_v36  ;;  %2594 = vmatprep.mubr.msk.bf16.mxu1 %vm2977_vm0, %v2976_v0 }
0x2193   :  { %2592 = vmatprep.subr.bf16.mxu1 %v2976_v0 }
0x2196   :  { %2593 = vmatpush3.bf16.msra.mxu1 %v3160_v39 }
0x2197   :  { %2606 = vmatprep.subr.bf16.mxu1 %v2976_v0 }
0x225c   :  { %v1405_v34 = vpop.f32.mrb[36].mxu1 }
0x225d   :  { %v3461_v47 = vadd.f32 %v3225_v13, %v1405_v34  ;;  %v2570_v35 = vpop.f32.mrb[37].mxu1 }
0x225e   :  { %v1408_v10 = vpop.f32.mrb[38].mxu1 }
0x225f   :  { %v1411_v11 = vmul.f32 0.1, %v3461_v47  ;;  %v2571_v12 = vpop.f32.mrb[39].mxu1 }
0x2261   :  { %v3465_v36 = vadd.f32 %v1411_v11, %v3407_v59 }
0x2263   :  { %v2717_v14 = vpack.i.bf16 %v3465_v36, %v1251_v42 }
0x2264   :  { %v1526_v16 = vpop.f32.mrb[40].mxu1 }
0x2265   :  { %2718 = vrot.lane.b32.xlu1 %v2717_v14, %s2978_s4  ;;  %v2588_v39 = vpop.f32.mrb[41].mxu1 }
0x2266   :  { %v1529_v20 = vpop.f32.mrb[42].mxu1 }
0x2267   :  { %v2589_v22 = vpop.f32.mrb[43].mxu1 }
0x22d7   :  { %v2719_v23 = vpop.permute.xlu1 %2718 }
0x22d8   :  { %v2721_v24 = vunpack.i.h.bf16 %v2719_v23  ;;  %v2720_v3 = vunpack.i.l.bf16 %v2719_v23  ;;  %v3536_v23 = vld [vmem:[%s3697_s6 + $0x8] sm:$0xff]  }
0x22da   :  { %v1421_v60 = vsel %vm166_vm4, %v2720_v3, %v2721_v24  ;;  %v3544_v24 = vld [vmem:[%s3696_s5] sm:$0xff]   ;;  %v3553_v3 = vld [vmem:[%s3696_s5 + $0x8] sm:$0xff]  }
0x22db   :  { %v1422_v26 = vpack.c.bf16 %v1421_v60, %v1421_v60 }
0x22dd   :  { %2579 = vmatmul.mubr.msk.bf16.vlgmr.msra.gmra.mrb[44].mxu0 %vm184_vm5, %v1422_v26 }
0x22de   :  { %2599 = vmatpush3.bf16.msra.mxu0 %v3195_v4  ;;  %2602 = vmatprep.mubr.msk.bf16.mxu0 %vm2977_vm0, %v2976_v0 }
0x22df   :  { %2600 = vmatprep.subr.bf16.mxu0 %v2976_v0 }
0x22e2   :  { %2601 = vmatpush3.bf16.msra.mxu0 %v3201_v5 }
0x22e3   :  { %2616 = vmatprep.subr.bf16.mxu0 %v2976_v0 }
0x23b0   :  { %v1460_v27 = vpop.f32.mrb[44].mxu0 }
0x23b1   :  { %v1466_v28 = vadd.f32 %v1460_v27, %v3128_v18  ;;  %v2580_v31 = vpop.f32.mrb[45].mxu0 }
0x23b2   :  { %v1463_v1 = vpop.f32.mrb[46].mxu0 }
0x23b3   :  { %2821 = vtanh.f32 %v1466_v28  ;;  %v2581_v32 = vpop.f32.mrb[47].mxu0  ;;  %v2273_v4 = vmul.f32 -1.442695, %v1466_v28 }
0x23b5   :  { %2823 = vpow2.f32 %v2273_v4 }
0x23bd   :  { %v2822_v37 = vpop.eup %2821 }
0x23be   :  { %1476 = vrot.lane.b32.xlu0 %v2822_v37, %s2979_s2 }
0x23bf   :  { %v2824_v17 = vpop.eup %2823 }
0x23c0   :  { %v1470_v41 = vadd.f32 1.0, %v2824_v17 }
0x23c2   :  { %2825 = vrcp.f32 %v1470_v41 }
0x23cc   :  { %v2826_v42 = vpop.eup %2825 }
0x23cd   :  { %v1474_v44 = vmul.f32 %v2826_v42, %v3423_v38  ;;  %v3494_v38 = vld [vmem:[%s3694_s3] sm:$0xff]   ;;  %s2945_s3 = scalar_lea.vmem %s2221_s15, 128 }
0x23ce   :  { %p2946_p10 = scmp.ne.s32.totalorder %s2221_s15, %s2945_s3  ;;  %p2951_p12 = scmp.lt.s32.totalorder %s2945_s3, %s2945_s3 }
0x23d0   :  { %p2952_p13 = por %p2951_p12, %p2950_p11 }
0x23d2   :  { %p2953_p0 = pnand %p2952_p13, %p2946_p10 }
0x2430   :  { %v1477_v43 = vpop.permute.xlu0 %1476 }
0x2431   :  { %v1479_v5 = vmul.f32 %v2826_v42, %v1477_v43 }
0x2433   :  { %1481 = vrot.lane.b32.xlu1 %v1479_v5, %s2978_s4 }
0x24a5   :  { %v1482_v19 = vpop.permute.xlu1 %1481 }
0x24a6   :  { %v3481_v46 = vadd.f32 %v1482_v19, %v1474_v44 }
0x24a8   :  { %2827 = vtanh.f32 %v3481_v46 }
0x24b2   :  { %v2828_v49 = vpop.eup %2827 }
0x24b3   :  { %1487 = vrot.lane.b32.xlu0 %v2828_v49, %s2979_s2  ;;  %v3572_v49 = vld [vmem:[%s3699_s8] sm:$0xff]  }
0x2525   :  { %v1488_v50 = vpop.permute.xlu0 %1487 }
0x2526   :  { %v3485_v52 = vmul.f32 %v2826_v42, %v1488_v50  ;;  %v3581_v50 = vld [vmem:[%s3699_s8 + $0x8] sm:$0xff]  }
0x2528   :  { %v1491_v2 = vpack.c.bf16 %v3485_v52, %v3485_v52 }
0x252a   :  { %1533 = vrot.lane.b32.xlu1 %v1491_v2, %s2978_s4 }
0x259c   :  { %v1534_v53 = vpop.permute.xlu1 %1533 }
0x259d   :  { %2595 = vmatmul.mubr.msk.bf16.vlgmr.msra.gmra.mrb[44].mxu1 %vm166_vm4, %v1534_v53 }
0x259e   :  { %2607 = vmatpush3.bf16.msra.mxu1 %v3494_v38  ;;  %2612 = vmatprep.mubr.msk.bf16.mxu1 %vm2977_vm0, %v2976_v0 }
0x259f   :  { %2608 = vmatprep.subr.bf16.mxu1 %v2976_v0 }
0x25a2   :  { %2609 = vmatpush3.bf16.msra.mxu1 %v3503_v54 }
0x25a3   :  { %2610 = vmatprep.subr.bf16.mxu1 %v2976_v0 }
0x25a6   :  { %2611 = vmatpush3.bf16.msra.mxu1 %v3120_v9 }
0x25a7   :  { %2632 = vmatprep.subr.bf16.mxu1 %v2976_v0 }
0x2670   :  { %v1572_v6 = vpop.f32.mrb[44].mxu1 }
0x2671   :  { %v1573_v29 = vadd.f32 %v1572_v6, %v1526_v16  ;;  %v2596_v56 = vpop.f32.mrb[45].mxu1 }
0x2672   :  { %v1575_v33 = vpop.f32.mrb[46].mxu1 }
0x2673   :  { %v1578_v58 = vadd.f32 %v3512_v57, %v1573_v29  ;;  %v2597_v61 = vpop.f32.mrb[47].mxu1 }
0x2675   :  { %2829 = vtanh.f32 %v1578_v58  ;;  %v2276_v63 = vmul.f32 -1.442695, %v1578_v58 }
0x2677   :  { %2831 = vpow2.f32 %v2276_v63 }
0x267f   :  { %v2830_v48 = vpop.eup %2829 }
0x2680   :  { %1588 = vrot.lane.b32.xlu0 %v2830_v48, %s2979_s2 }
0x2681   :  { %v2832_v7 = vpop.eup %2831 }
0x2682   :  { %v1582_v8 = vadd.f32 1.0, %v2832_v7 }
0x2684   :  { %2833 = vrcp.f32 %v1582_v8 }
0x268e   :  { %v2834_v51 = vpop.eup %2833 }
0x268f   :  { %v1586_v10 = vmul.f32 %v2834_v51, %v3441_v62  ;;  %v3527_v62 = vld [vmem:[%s3697_s6] sm:$0xff]  }
0x26f2   :  { %v1589_v34 = vpop.permute.xlu0 %1588 }
0x26f3   :  { %v1591_v35 = vmul.f32 %v2834_v51, %v1589_v34 }
0x26f5   :  { %1593 = vrot.lane.b32.xlu1 %v1591_v35, %s2978_s4 }
0x2767   :  { %v1594_v11 = vpop.permute.xlu1 %1593 }
0x2768   :  { %v3518_v12 = vadd.f32 %v1594_v11, %v1586_v10 }
0x276a   :  { %2835 = vtanh.f32 %v3518_v12 }
0x2774   :  { %v2836_v14 = vpop.eup %2835 }
0x2775   :  { %1599 = vrot.lane.b32.xlu0 %v2836_v14, %s2979_s2 }
0x27e7   :  { %v1600_v16 = vpop.permute.xlu0 %1599 }
0x27e8   :  { %v1602_v39 = vmul.f32 %v2834_v51, %v1600_v16 }
0x27ea   :  { %v1603_v20 = vpack.c.bf16 %v1602_v39, %v1602_v39 }
0x27ec   :  { %1605 = vrot.lane.b32.xlu1 %v1603_v20, %s2978_s4 }
0x285e   :  { %v1606_v22 = vpop.permute.xlu1 %1605 }
0x285f   :  { %2603 = vmatmul.mubr.msk.bf16.vlgmr.msra.gmra.mrb[48].mxu0 %vm166_vm4, %v1606_v22 }
0x2860   :  { %2617 = vmatpush3.bf16.msra.mxu0 %v3527_v62  ;;  %2620 = vmatprep.mubr.msk.bf16.mxu0 %vm2977_vm0, %v2976_v0 }
0x2861   :  { %2618 = vmatprep.subr.bf16.mxu0 %v2976_v0 }
0x2864   :  { %2619 = vmatpush3.bf16.msra.mxu0 %v3536_v23 }
0x2865   :  { %2624 = vmatprep.subr.bf16.mxu0 %v2976_v0 }
0x2867   :  { %2621 = vmatmul.mubr.msk.bf16.vlgmr.msra.gmra.mrb[52].mxu0 %vm166_vm4, %v1606_v22 }
0x2868   :  { %2625 = vmatpush3.bf16.msra.mxu0 %v3544_v24  ;;  %2628 = vmatprep.mubr.msk.bf16.mxu0 %vm2977_vm0, %v2976_v0 }
0x2869   :  { %2626 = vmatprep.subr.bf16.mxu0 %v2976_v0 }
0x286c   :  { %2627 = vmatpush3.bf16.msra.mxu0 %v3553_v3 }
0x286d   :  { %2640 = vmatprep.subr.bf16.mxu0 %v2976_v0 }
0x2932   :  { %v1644_v60 = vpop.f32.mrb[48].mxu0 }
0x2933   :  { %v3558_v26 = vadd.f32 %v3225_v13, %v1644_v60  ;;  %v2604_v27 = vpop.f32.mrb[49].mxu0 }
0x2934   :  { %v1647_v28 = vpop.f32.mrb[50].mxu0 }
0x2935   :  { %v1650_v31 = vmul.f32 0.1, %v3558_v26  ;;  %v2605_v1 = vpop.f32.mrb[51].mxu0 }
0x2937   :  { %v3562_v32 = vadd.f32 %v1650_v31, %v3465_v36 }
0x2939   :  { %v2722_v37 = vpack.i.bf16 %v3562_v32, %v3485_v52 }
0x293a   :  { %v1765_v4 = vpop.f32.mrb[52].mxu0 }
0x293b   :  { %2723 = vrot.lane.b32.xlu0 %v2722_v37, %s2978_s4  ;;  %v2622_v17 = vpop.f32.mrb[53].mxu0 }
0x293c   :  { %v1768_v41 = vpop.f32.mrb[54].mxu0 }
0x293d   :  { %v2623_v42 = vpop.f32.mrb[55].mxu0 }
0x29ad   :  { %v2724_v43 = vpop.permute.xlu0 %2723 }
0x29ae   :  { %v2726_v13 = vunpack.i.h.bf16 %v2724_v43  ;;  %v2725_v5 = vunpack.i.l.bf16 %v2724_v43 }
0x29b0   :  { %v1660_v44 = vsel %vm166_vm4, %v2725_v5, %v2726_v13 }
0x29b1   :  { %v1661_v19 = vpack.c.bf16 %v1660_v44, %v1660_v44 }
0x29b3   :  { %2613 = vmatmul.mubr.msk.bf16.vlgmr.msra.gmra.mrb[48].mxu1 %vm184_vm5, %v1661_v19 }
0x29b4   :  { %2633 = vmatpush3.bf16.msra.mxu1 %v3572_v49  ;;  %2636 = vmatprep.mubr.msk.bf16.mxu1 %vm2977_vm0, %v2976_v0 }
0x29b5   :  { %2634 = vmatprep.subr.bf16.mxu1 %v2976_v0 }
0x29b8   :  { %2635 = vmatpush3.bf16.msra.mxu1 %v3581_v50 }
0x29b9   :  { %2650 = vmatprep.subr.bf16.mxu1 %v2976_v0 }
0x2a86   :  { %v1699_v52 = vpop.f32.mrb[48].mxu1 }
0x2a87   :  { %v1705_v2 = vadd.f32 %v1699_v52, %v3128_v18  ;;  %v2614_v53 = vpop.f32.mrb[49].mxu1 }
0x2a88   :  { %v1702_v6 = vpop.f32.mrb[50].mxu1 }
0x2a89   :  { %2837 = vtanh.f32 %v1705_v2  ;;  %v2615_v29 = vpop.f32.mrb[51].mxu1  ;;  %v2279_v33 = vmul.f32 -1.442695, %v1705_v2 }
0x2a8b   :  { %2839 = vpow2.f32 %v2279_v33 }
0x2a93   :  { %v2838_v56 = vpop.eup %2837 }
0x2a94   :  { %1715 = vrot.lane.b32.xlu1 %v2838_v56, %s2979_s2 }
0x2a95   :  { %v2840_v58 = vpop.eup %2839 }
0x2a96   :  { %v1709_v61 = vadd.f32 1.0, %v2840_v58 }
0x2a98   :  { %2841 = vrcp.f32 %v1709_v61 }
0x2aa2   :  { %v2842_v48 = vpop.eup %2841 }
0x2aa3   :  { %v1713_v8 = vmul.f32 %v2842_v48, %v3481_v46 }
0x2b06   :  { %v1716_v63 = vpop.permute.xlu1 %1715 }
0x2b07   :  { %v1718_v7 = vmul.f32 %v2842_v48, %v1716_v63 }
0x2b09   :  { %1720 = vrot.lane.b32.xlu0 %v1718_v7, %s2978_s4 }
0x2b7b   :  { %v1721_v51 = vpop.permute.xlu0 %1720 }
0x2b7c   :  { %v3589_v34 = vadd.f32 %v1721_v51, %v1713_v8 }
0x2b7e   :  { %2843 = vtanh.f32 %v3589_v34 }
0x2b88   :  { %v2844_v35 = vpop.eup %2843 }
0x2b89   :  { %1726 = vrot.lane.b32.xlu1 %v2844_v35, %s2979_s2 }
0x2bfb   :  { %v1727_v10 = vpop.permute.xlu1 %1726 }
0x2bfc   :  { %v1729_v11 = vmul.f32 %v2842_v48, %v1727_v10 }
0x2bfe   :  { %v1730_v14 = vpack.c.bf16 %v1729_v11, %v1729_v11 }
0x2c00   :  { %1772 = vrot.lane.b32.xlu0 %v1730_v14, %s2978_s4 }
0x2c72   :  { %v1773_v16 = vpop.permute.xlu0 %1772 }
0x2c73   :  { %2629 = vmatmul.mubr.msk.bf16.vlgmr.msra.gmra.mrb[56].mxu0 %vm166_vm4, %v1773_v16 }
0x2c74   :  { %2641 = vmatpush3.bf16.msra.mxu0 %v3494_v38  ;;  %2646 = vmatprep.mubr.msk.bf16.mxu0 %vm2977_vm0, %v2976_v0 }
0x2c75   :  { %2642 = vmatprep.subr.bf16.mxu0 %v2976_v0 }
0x2c78   :  { %2643 = vmatpush3.bf16.msra.mxu0 %v3503_v54 }
0x2c79   :  { %2644 = vmatprep.subr.bf16.mxu0 %v2976_v0 }
0x2c7c   :  { %2645 = vmatpush3.bf16.msra.mxu0 %v3120_v9 }
0x2c7d   :  { %2666 = vmatprep.subr.bf16.mxu0 %v2976_v0 }
0x2d46   :  { %v1811_v46 = vpop.f32.mrb[56].mxu0 }
0x2d47   :  { %v1812_v39 = vadd.f32 %v1811_v46, %v1765_v4  ;;  %v2630_v20 = vpop.f32.mrb[57].mxu0 }
0x2d48   :  { %v1814_v22 = vpop.f32.mrb[58].mxu0 }
0x2d49   :  { %v1817_v60 = vadd.f32 %v3512_v57, %v1812_v39  ;;  %v2631_v38 = vpop.f32.mrb[59].mxu0 }
0x2d4b   :  { %2845 = vtanh.f32 %v1817_v60  ;;  %v2282_v28 = vmul.f32 -1.442695, %v1817_v60 }
0x2d4d   :  { %2847 = vpow2.f32 %v2282_v28 }
0x2d55   :  { %v2846_v27 = vpop.eup %2845 }
0x2d56   :  { %1827 = vrot.lane.b32.xlu1 %v2846_v27, %s2979_s2 }
0x2d57   :  { %v2848_v54 = vpop.eup %2847 }
0x2d58   :  { %v1821_v31 = vadd.f32 1.0, %v2848_v54 }
0x2d5a   :  { %2849 = vrcp.f32 %v1821_v31 }
0x2d64   :  { %v2850_v1 = vpop.eup %2849 }
0x2d65   :  { %v1825_v4 = vmul.f32 %v2850_v1, %v3518_v12 }
0x2dc8   :  { %v1828_v9 = vpop.permute.xlu1 %1827 }
0x2dc9   :  { %v1830_v37 = vmul.f32 %v2850_v1, %v1828_v9 }
0x2dcb   :  { %1832 = vrot.lane.b32.xlu0 %v1830_v37, %s2978_s4 }
0x2e3d   :  { %v1833_v17 = vpop.permute.xlu0 %1832 }
0x2e3e   :  { %v3607_v41 = vadd.f32 %v1833_v17, %v1825_v4 }
0x2e40   :  { %2851 = vtanh.f32 %v3607_v41 }
0x2e4a   :  { %v2852_v42 = vpop.eup %2851 }
0x2e4b   :  { %1838 = vrot.lane.b32.xlu1 %v2852_v42, %s2979_s2 }
0x2ebd   :  { %v1839_v43 = vpop.permute.xlu1 %1838 }
0x2ebe   :  { %v1841_v13 = vmul.f32 %v2850_v1, %v1839_v43 }
0x2ec0   :  { %v1842_v5 = vpack.c.bf16 %v1841_v13, %v1841_v13 }
0x2ec2   :  { %1844 = vrot.lane.b32.xlu0 %v1842_v5, %s2978_s4 }
0x2f34   :  { %v1845_v44 = vpop.permute.xlu0 %1844 }
0x2f35   :  { %2637 = vmatmul.mubr.msk.bf16.vlgmr.msra.gmra.mrb[52].mxu1 %vm166_vm4, %v1845_v44 }
0x2f36   :  { %2651 = vmatpush3.bf16.msra.mxu1 %v3527_v62  ;;  %2654 = vmatprep.mubr.msk.bf16.mxu1 %vm2977_vm0, %v2976_v0  ;;  %v3628_v62 = vld [vmem:[%s3700_s9] ss:$0 sm:$0xff]  ;;  %s2981_s9 = smov 4  }
0x2f37   :  { %2652 = vmatprep.subr.bf16.mxu1 %v2976_v0 }
0x2f3a   :  { %2653 = vmatpush3.bf16.msra.mxu1 %v3536_v23 }
0x2f3b   :  { %2658 = vmatprep.subr.bf16.mxu1 %v2976_v0 }
0x2f3d   :  { %2655 = vmatmul.mubr.msk.bf16.vlgmr.msra.gmra.mrb[56].mxu1 %vm166_vm4, %v1845_v44 }
0x2f3e   :  { %2659 = vmatpush3.bf16.msra.mxu1 %v3544_v24  ;;  %2662 = vmatprep.mubr.msk.bf16.mxu1 %vm2977_vm0, %v2976_v0 }
0x2f3f   :  { %2660 = vmatprep.subr.bf16.mxu1 %v2976_v0 }
0x2f42   :  { %2661 = vmatpush3.bf16.msra.mxu1 %v3553_v3 }
0x3008   :  { %v1883_v12 = vpop.f32.mrb[52].mxu1 }
0x3009   :  { %v3631_v23 = vadd.f32 %v3628_v62, %v1883_v12  ;;  %v2638_v19 = vpop.f32.mrb[53].mxu1 }
0x300a   :  { %v1886_v52 = vpop.f32.mrb[54].mxu1 }
0x300b   :  { %v1889_v24 = vmul.f32 0.1, %v3631_v23  ;;  %v2639_v2 = vpop.f32.mrb[55].mxu1 }
0x300d   :  { %v3635_v53 = vadd.f32 %v1889_v24, %v3562_v32 }
0x300f   :  { %v2727_v6 = vpack.i.bf16 %v3635_v53, %v1729_v11 }
0x3010   :  { %v2004_v3 = vpop.f32.mrb[56].mxu1 }
0x3011   :  { %2728 = vrot.lane.b32.xlu1 %v2727_v6, %s2978_s4  ;;  %v2656_v29 = vpop.f32.mrb[57].mxu1 }
0x3012   :  { %v2007_v56 = vpop.f32.mrb[58].mxu1 }
0x3013   :  { %v2657_v33 = vpop.f32.mrb[59].mxu1 }
0x3083   :  { %v2729_v58 = vpop.permute.xlu1 %2728 }
0x3084   :  { %v2731_v61 = vunpack.i.h.bf16 %v2729_v58  ;;  %v2730_v48 = vunpack.i.l.bf16 %v2729_v58 }
0x3086   :  { %v1899_v63 = vsel %vm166_vm4, %v2730_v48, %v2731_v61 }
0x3087   :  { %v1900_v7 = vpack.c.bf16 %v1899_v63, %v1899_v63 }
0x3089   :  { %2647 = vmatmul.mubr.msk.bf16.vlgmr.msra.gmra.mrb[60].mxu0 %vm184_vm5, %v1900_v7 }
0x308a   :  { %2667 = vmatpush3.bf16.msra.mxu0 %v3572_v49  ;;  %2670 = vmatprep.mubr.msk.bf16.mxu0 %vm2977_vm0, %v2976_v0  ;;  %vm2206_vm0 = vcmask 424960  }
0x308b   :  { %2668 = vmatprep.subr.bf16.mxu0 %v2976_v0 }
0x308e   :  { %2669 = vmatpush3.bf16.msra.mxu0 %v3581_v50 }
0x315c   :  { %v1938_v8 = vpop.f32.mrb[60].mxu0 }
0x315d   :  { %v1944_v51 = vadd.f32 %v1938_v8, %v3128_v18  ;;  %v2648_v35 = vpop.f32.mrb[61].mxu0 }
0x315e   :  { %v1941_v10 = vpop.f32.mrb[62].mxu0 }
0x315f   :  { %2853 = vtanh.f32 %v1944_v51  ;;  %v2649_v11 = vpop.f32.mrb[63].mxu0  ;;  %v2285_v16 = vmul.f32 -1.442695, %v1944_v51 }
0x3161   :  { %2855 = vpow2.f32 %v2285_v16 }
0x3169   :  { %v2854_v14 = vpop.eup %2853 }
0x316a   :  { %1954 = vrot.lane.b32.xlu0 %v2854_v14, %s2979_s2 }
0x316b   :  { %v2856_v49 = vpop.eup %2855 }
0x316c   :  { %v1948_v46 = vadd.f32 1.0, %v2856_v49 }
0x316e   :  { %2857 = vrcp.f32 %v1948_v46 }
0x3178   :  { %v2858_v39 = vpop.eup %2857 }
0x3179   :  { %v1952_v50 = vmul.f32 %v2858_v39, %v3589_v34 }
0x31dc   :  { %v1955_v20 = vpop.permute.xlu0 %1954 }
0x31dd   :  { %v1957_v0 = vmul.f32 %v2858_v39, %v1955_v20 }
0x31df   :  { %1959 = vrot.lane.b32.xlu1 %v1957_v0, %s2978_s4 }
0x3251   :  { %v1960_v18 = vpop.permute.xlu1 %1959 }
0x3252   :  { %v1962_v22 = vadd.f32 %v1960_v18, %v1952_v50 }
0x3254   :  { %2859 = vtanh.f32 %v1962_v22 }
0x325e   :  { %v2860_v60 = vpop.eup %2859 }
0x325f   :  { %1965 = vrot.lane.b32.xlu0 %v2860_v60, %s2979_s2 }
0x32d1   :  { %v1966_v38 = vpop.permute.xlu0 %1965 }
0x32d2   :  { %v1968_v27 = vmul.f32 %v2858_v39, %v1966_v38 }
0x32d4   :  { %v1969_v28 = vpack.c.bf16 %v1968_v27, %v1968_v27 }
0x32d6   :  { %2011 = vrot.lane.b32.xlu1 %v1969_v28, %s2978_s4 }
0x3348   :  { %v2012_v54 = vpop.permute.xlu1 %2011 }
0x3349   :  { %2663 = vmatmul.mubr.msk.bf16.vlgmr.msra.gmra.mrb[60].mxu1 %vm166_vm4, %v2012_v54 }
0x341c   :  { %v2050_v31 = vpop.f32.mrb[60].mxu1 }
0x341d   :  { %v2051_v1 = vadd.f32 %v2050_v31, %v2004_v3  ;;  %v2664_v9 = vpop.f32.mrb[61].mxu1 }
0x341e   :  { %v2053_v37 = vpop.f32.mrb[62].mxu1 }
0x341f   :  { %v2056_v34 = vadd.f32 %v3512_v57, %v2051_v1  ;;  %v2665_v4 = vpop.f32.mrb[63].mxu1 }
0x3421   :  { %2861 = vtanh.f32 %v2056_v34  ;;  %v2288_v42 = vmul.f32 -1.442695, %v2056_v34 }
0x3423   :  { %2863 = vpow2.f32 %v2288_v42 }
0x342b   :  { %v2862_v17 = vpop.eup %2861 }
0x342c   :  { %2066 = vrot.lane.b32.xlu0 %v2862_v17, %s2979_s2 }
0x342d   :  { %v2864_v43 = vpop.eup %2863 }
0x342e   :  { %v2060_v13 = vadd.f32 1.0, %v2864_v43 }
0x3430   :  { %2865 = vrcp.f32 %v2060_v13 }
0x343a   :  { %v2866_v5 = vpop.eup %2865 }
0x343b   :  { %v2064_v19 = vmul.f32 %v2866_v5, %v3607_v41 }
0x349e   :  { %v2067_v44 = vpop.permute.xlu0 %2066 }
0x349f   :  { %v2069_v12 = vmul.f32 %v2866_v5, %v2067_v44 }
0x34a1   :  { %2071 = vrot.lane.b32.xlu1 %v2069_v12, %s2978_s4 }
0x3513   :  { %v2072_v52 = vpop.permute.xlu1 %2071 }
0x3514   :  { %v2074_v24 = vadd.f32 %v2072_v52, %v2064_v19 }
0x3516   :  { %2867 = vtanh.f32 %v2074_v24 }
0x3520   :  { %v2868_v57 = vpop.eup %2867 }
0x3521   :  { %2077 = vrot.lane.b32.xlu0 %v2868_v57, %s2979_s2  ;;  %s2986_s2 = smov 8  }
0x3525   :  { %2130 = vrot.lane.b32.xlu0 %v3291_v30, %s2981_s9 }
0x3529   :  { %2136 = vrot.lane.b32.xlu0 %v3407_v59, %s2982_s25 }
0x352d   :  { %2142 = vrot.lane.b32.xlu0 %v3562_v32, %s2983_s26 }
0x3531   :  { %2157 = vrot.lane.b32.xlu0 %v3287_v25, %s2984_s0 }
0x3535   :  { %2165 = vrot.lane.b32.xlu0 %v3403_v55, %s2985_s16 }
0x3593   :  { %v2078_v41 = vpop.permute.xlu0 %2077 }
0x3594   :  { %v2080_v2 = vmul.f32 %v2866_v5, %v2078_v41 }
0x3596   :  { %v2081_v6 = vpack.c.bf16 %v2080_v2, %v2080_v2 }
0x3598   :  { %2083 = vrot.lane.b32.xlu1 %v2081_v6, %s2978_s4 }
0x359c   :  { %2133 = vrot.lane.b32.xlu1 %v3349_v45, %s2986_s2 }
0x35a0   :  { %2139 = vrot.lane.b32.xlu1 %v3465_v36, %s2987_s27 }
0x35a4   :  { %2145 = vrot.lane.b32.xlu1 %v3635_v53, %s2988_s28 }
0x35a8   :  { %2153 = vrot.lane.b32.xlu1 %v3228_v15, %s2978_s4  ;;  %s2992_s4 = smov 28  }
0x35ac   :  { %2161 = vrot.lane.b32.xlu1 %v3345_v40, %s2989_s29 }
0x35b0   :  { %2169 = vrot.lane.b32.xlu1 %v3461_v47, %s2990_s30  ;;  %v2131_v47 = vpop.permute.xlu0 %2130 }
0x35b1   :  { %v2185_v58 = vsel %vm2184_vm6, %v3232_v21, %v2131_v47 }
0x35b4   :  { %2177 = vrot.lane.b32.xlu1 %v3631_v23, %s2991_s11  ;;  %v2137_v3 = vpop.permute.xlu0 %2136 }
0x35b8   :  { %v2143_v56 = vpop.permute.xlu0 %2142 }
0x35bc   :  { %v2158_v33 = vpop.permute.xlu0 %2157 }
0x360a   :  { %v2084_v25 = vpop.permute.xlu1 %2083 }
0x360b   :  { %2671 = vmatmul.mubr.msk.bf16.vlgmr.msra.gmra.mrb[64].mxu0 %vm166_vm4, %v2084_v25 }
0x360e   :  { %v2134_v40 = vpop.permute.xlu1 %2133 }
0x3612   :  { %v2140_v23 = vpop.permute.xlu1 %2139 }
0x3616   :  { %v2146_v29 = vpop.permute.xlu1 %2145 }
0x36de   :  { %v2122_v30 = vpop.f32.mrb[64].mxu0 }
0x36df   :  { %v2123_v45 = vadd.f32 %v3628_v62, %v2122_v30  ;;  %v2672_v55 = vpop.f32.mrb[65].mxu0  ;;  %v2154_v62 = vpop.permute.xlu1 %2153 }
0x36e0   :  { %v2125_v59 = vpop.f32.mrb[66].mxu0 }
0x36e1   :  { %v2128_v36 = vmul.f32 0.1, %v2123_v45  ;;  %v2673_v32 = vpop.f32.mrb[67].mxu0 }
0x36e3   :  { %v2129_v15 = vadd.f32 %v2128_v36, %v3635_v53  ;;  %v2187_v53 = vsel %vm2186_vm7, %v2185_v58, %v2134_v40  ;;  %v2162_v48 = vpop.permute.xlu1 %2161 }
0x36e4   :  { %v2189_v61 = vsel %vm2188_vm8, %v2187_v53, %v2137_v3 }
0x36e5   :  { %2149 = vrot.lane.b32.xlu0 %v2129_v15, %s2992_s4  ;;  %v2191_v63 = vsel %vm2190_vm9, %v2189_v61, %v2140_v23 }
0x36e6   :  { %v2193_v7 = vsel %vm2192_vm10, %v2191_v63, %v2143_v56 }
0x36e7   :  { %v2195_v8 = vsel %vm2194_vm11, %v2193_v7, %v2146_v29  ;;  %v2170_v35 = vpop.permute.xlu1 %2169 }
0x36e9   :  { %2173 = vrot.lane.b32.xlu0 %v3558_v26, %s2993_s12  ;;  %v2166_v26 = vpop.permute.xlu0 %2165 }
0x36eb   :  { %v2178_v39 = vpop.permute.xlu1 %2177 }
0x36ed   :  { %2181 = vrot.lane.b32.xlu0 %v2123_v45, %s2994_s13 }
0x3757   :  { %v2150_v51 = vpop.permute.xlu0 %2149 }
0x3758   :  { %v2197_v10 = vsel %vm2196_vm12, %v2195_v8, %v2150_v51 }
0x3759   :  { %v2198_v11 = vsel %vm166_vm4, %v2197_v10, %v2154_v62 }
0x375a   :  { %v2199_v21 = vsel %vm184_vm5, %v2198_v11, %v2158_v33 }
0x375b   :  { %v2201_v14 = vsel %vm2200_vm13, %v2199_v21, %v2162_v48  ;;  %v2174_v16 = vpop.permute.xlu0 %2173 }
0x375c   :  { %v2203_v49 = vsel %vm2202_vm14, %v2201_v14, %v2166_v26 }
0x375d   :  { %v2205_v46 = vsel %vm2204_vm15, %v2203_v49, %v2170_v35 }
0x375e   :  { %v2207_v20 = vsel %vm2206_vm0, %v2205_v46, %v2174_v16 }
0x375f   :  { %v2209_v0 = vsel %vm2208_vm1, %v2207_v20, %v2178_v39  ;;  %v2182_v50 = vpop.permute.xlu0 %2181 }
0x3760   :  { %v2211_v18 = vsel %vm2210_vm2, %v2209_v0, %v2182_v50 }
0x3761   :  { %2213 = vst.msk [vmem:[#allocation8] sm:$0xff] %vm2212_vm3, %v2211_v18 }
0x3762   :  { %2956 = shalt.err (!%p2953_p0)
}
0x3763   :  { %s2957_s17 = scalar_lea.hbm %s3701_s10, 128 }
0x3764   :  { %p2958_p1 = scmp.ne.s32.totalorder %s3701_s10, %s2957_s17  ;;  %p2961_p2 = scmp.lt.u32.totalorder %s2957_s17, %s3701_s10 }
0x3766   :  { %p2963_p3 = pnand %p2961_p2, %p2958_p1 }
0x3768   :  { %2966 = shalt.err (!%p2963_p3)
}
0x3769   :  { %2223 = dma.vmem_to_hbm [thread:$0]  %s2221_s15, 128, %s3701_s10, [#allocation4]  }
0x376a   :  { %2971 = dma.done.wait [#allocation4], 128  }
0x376b   :  { %2972 = vsyncadd [#allocation4], 4294967168 }
0x376c   :  { %2227 = vsyncpa [#allocation3], 1 }
0x376d   :  { %2228 = vsyncpa [#allocation6], 1 }
0x376e   :  { %2229 = vsyncpa [#allocation4], 1 }

</bundles_post_ra>
